<compile_context>
chip_gen: v6e
topology: v6e:2x2x1
jax: 0.10.0
libtpu: 0.0.40
codegen_flags: <defaults>
</compile_context>

<pallas_src>
import functools

import jax
import jax.numpy as jnp
import numpy as np
from jax.experimental import pallas as pl
from jax.experimental.pallas import tpu as pltpu


def _round_up(x, m):
    return (x + m - 1) // m * m


def _tuning():
    """Pick (vmem_limit_bytes, row_tile) per TPU generation; conservative fallback."""
    try:
        cap = pltpu.get_tpu_info().vmem_capacity_bytes
    except Exception:
        cap = 64 * 1024 * 1024
    if cap <= 64 * 1024 * 1024:          # v7x: 64 MiB physical VMEM per TensorCore
        return 48 * 1024 * 1024, 256
    return 96 * 1024 * 1024, 512          # v5e / v6e: 128 MiB physical VMEM


VMEM_LIMIT, ROW_TILE = _tuning()


# ------------------------------------------------------------------
# Kernel A: fused encoder + start/end heads (gridded over row tiles of (B*S, Din)).
#   x = bf16(ce) @ bf16(w_map)                      -> input_state tile (stored in bf16)
#   h = bf16(x) @ bf16([w1_start | w1_end])          -> one fused (tile, 4H) first-layer matmul
#   per-half ReLU+LayerNorm (one-pass stats, half-masks), then the two width-1 projections are
#   VPU multiply + cross-lane sums against zero-padded (1, 4H) rows -> (tile, 2) logits slab.
# ------------------------------------------------------------------
def _encode_heads_kernel(ce_ref, wmap_ref, w1se_ref, b1se_ref, gse_ref, bse_ref,
                         w2s_ref, w2e_ref, b2se_ref, state_ref, se_ref):
    x = jnp.dot(ce_ref[...].astype(jnp.bfloat16), wmap_ref[...],
                preferred_element_type=jnp.float32)                      # (tile, H) f32
    xb = x.astype(jnp.bfloat16)
    state_ref[...] = xb                                                  # bf16 writeback

    h = jnp.dot(xb, w1se_ref[...], preferred_element_type=jnp.float32) + b1se_ref[...]
    h = jnp.maximum(h, 0.0)                                              # (tile, 4H) f32

    fh = h.shape[-1]
    half = fh // 2
    lane = jax.lax.broadcasted_iota(jnp.int32, (1, fh), 1)
    m_s = (lane < half).astype(jnp.float32)
    m_e = 1.0 - m_s
    inv_n = 1.0 / half
    mu_s = jnp.sum(h * m_s, axis=-1, keepdims=True) * inv_n
    mu_e = jnp.sum(h * m_e, axis=-1, keepdims=True) * inv_n
    msq_s = jnp.sum(h * h * m_s, axis=-1, keepdims=True) * inv_n
    msq_e = jnp.sum(h * h * m_e, axis=-1, keepdims=True) * inv_n
    var_s = jnp.maximum(msq_s - mu_s * mu_s, 0.0)
    var_e = jnp.maximum(msq_e - mu_e * mu_e, 0.0)
    mu = mu_s * m_s + mu_e * m_e
    inv = jax.lax.rsqrt(var_s + 1e-12) * m_s + jax.lax.rsqrt(var_e + 1e-12) * m_e
    hn = (h - mu) * inv * gse_ref[...] + bse_ref[...]

    # Final width-1 projections on VPU/XLU (w2s/w2e rows are zero outside their own half).
    s = jnp.sum(hn * w2s_ref[...], axis=-1, keepdims=True)
    e = jnp.sum(hn * w2e_ref[...], axis=-1, keepdims=True)
    se_ref[...] = jnp.concatenate([s, e], axis=-1) + b2se_ref[...]


def encode_and_heads(ce_flat, wmap_bf16, w1se, b1se, gse, bse, w2s_row, w2e_row, b2se,
                     tm=ROW_TILE):
    M, Din = ce_flat.shape
    H = wmap_bf16.shape[1]
    Mp = _round_up(M, 8)
    tile = min(tm, Mp)
    Mp = _round_up(Mp, tile)
    if Mp != M:
        ce_flat = jnp.pad(ce_flat, ((0, Mp - M), (0, 0)))

    weights = (wmap_bf16, w1se, b1se, gse, bse, w2s_row, w2e_row, b2se)
    state, se = pl.pallas_call(
        _encode_heads_kernel,
        out_shape=(jax.ShapeDtypeStruct((Mp, H), jnp.bfloat16),
                   jax.ShapeDtypeStruct((Mp, 2), jnp.float32)),
        grid=(Mp // tile,),
        in_specs=[pl.BlockSpec((tile, Din), lambda i: (i, 0))]
                 + [pl.BlockSpec(w.shape, lambda i: (0, 0)) for w in weights],
        out_specs=(pl.BlockSpec((tile, H), lambda i: (i, 0)),
                   pl.BlockSpec((tile, 2), lambda i: (i, 0))),
        compiler_params=pltpu.CompilerParams(
            dimension_semantics=("parallel",), vmem_limit_bytes=VMEM_LIMIT),
    )(ce_flat, *weights)
    return state[:M], se[:M]


# ------------------------------------------------------------------
# Kernel B: fused para-gather + sent-gather + question-type OutputLayer heads.
# input_state is read from HBM ONCE per batch row; the gathers are one-shot iota one-hots
# (MXU matmul against the bf16 state block).  Gridded over the batch; "parallel" semantics
# (>= 2 grid steps for any B >= 2, so both v7x TensorCores get work).
# ------------------------------------------------------------------
def _gather_type_kernel(x_ref, pidx_ref, sidx_ref,
                        w1p_ref, b1p_ref, gp_ref, bp_ref, w2p_ref, c2p_ref,
                        w1s_ref, b1s_ref, gs_ref, bs_ref, w2s_ref, c2s_ref,
                        w1t_ref, b1t_ref, gt_ref, bt_ref, w2t_ref, c2t_ref,
                        para_o, sent_o, type_o):
    x = x_ref[0]                                      # (S, H) bf16
    S = x.shape[0]

    def one_hot(idx_col, k):                          # idx_col: (k, 1) int32
        lane = jax.lax.broadcasted_iota(jnp.int32, (k, S), 1)
        # out-of-range indices (e.g. -1 padding) produce all-zero rows == reference padding rows
        return (lane == idx_col).astype(jnp.float32).astype(x.dtype)

    def gather_pair(idx_ref):
        k = idx_ref.shape[2]
        sel_s = one_hot(idx_ref[0, 0], k)             # (k, S)
        sel_e = one_hot(idx_ref[0, 1], k)
        g_start = jnp.dot(sel_s, x, preferred_element_type=jnp.float32)   # (k, H)
        g_end = jnp.dot(sel_e, x, preferred_element_type=jnp.float32)     # (k, H)
        return jnp.concatenate([g_start, g_end], axis=-1)                  # (k, 2H)

    def head(st_in, w1, b1, g, beta, w2, b2):
        h = jnp.dot(st_in.astype(jnp.bfloat16), w1[...],
                    preferred_element_type=jnp.float32) + b1[...]
        h = jnp.maximum(h, 0.0)
        inv_n = 1.0 / h.shape[-1]
        mu = jnp.sum(h, axis=-1, keepdims=True) * inv_n
        msq = jnp.sum(h * h, axis=-1, keepdims=True) * inv_n
        var = jnp.maximum(msq - mu * mu, 0.0)
        hn = (h - mu) * jax.lax.rsqrt(var + 1e-12) * g[...] + beta[...]
        return jnp.dot(hn, w2[...], preferred_element_type=jnp.float32) + b2[...]

    para_o[0] = head(gather_pair(pidx_ref), w1p_ref, b1p_ref, gp_ref, bp_ref, w2p_ref, c2p_ref)
    sent_o[0] = head(gather_pair(sidx_ref), w1s_ref, b1s_ref, gs_ref, bs_ref, w2s_ref, c2s_ref)
    type_o[0] = head(x[0:1, :], w1t_ref, b1t_ref, gt_ref, bt_ref, w2t_ref, c2t_ref)


def gather_and_type(input_state, para_idx, sent_idx, para_p, sent_p, type_p):
    # input_state: (B, S, H) bf16; para_idx: (B, 2, P, 1) int32; sent_idx: (B, 2, Ns, 1) int32
    B, S, H = input_state.shape
    P = para_idx.shape[2]
    Ns = sent_idx.shape[2]
    T = type_p[4].shape[1]
    weights = tuple(para_p) + tuple(sent_p) + tuple(type_p)
    return pl.pallas_call(
        _gather_type_kernel,
        out_shape=(jax.ShapeDtypeStruct((B, P, 2), jnp.float32),
                   jax.ShapeDtypeStruct((B, Ns, 2), jnp.float32),
                   jax.ShapeDtypeStruct((B, 1, T), jnp.float32)),
        grid=(B,),
        in_specs=[pl.BlockSpec((1, S, H), lambda b: (b, 0, 0)),
                  pl.BlockSpec((1, 2, P, 1), lambda b: (b, 0, 0, 0)),
                  pl.BlockSpec((1, 2, Ns, 1), lambda b: (b, 0, 0, 0))]
                 + [pl.BlockSpec(w.shape, lambda b: (0, 0)) for w in weights],
        out_specs=(pl.BlockSpec((1, P, 2), lambda b: (b, 0, 0)),
                   pl.BlockSpec((1, Ns, 2), lambda b: (b, 0, 0)),
                   pl.BlockSpec((1, 1, T), lambda b: (b, 0, 0))),
        compiler_params=pltpu.CompilerParams(
            dimension_semantics=("parallel",), vmem_limit_bytes=VMEM_LIMIT),
    )(input_state, para_idx, sent_idx, *weights)


# ------------------------------------------------------------------
# Kernel C: span masking + banded yp1/yp2 argmax (eval path).
# Band: answer end j in [i, i+15].  The (B,S,S) outer matrix is never materialised: 15 lane
# rolls of the end/start logits (XLU slot) accumulate running maxima -> O(16*S) work.
# ------------------------------------------------------------------
def _span_kernel(st_ref, en_ref, cm_ref, qm_ref, st_o, en_o, yp1_o, yp2_o, *, max_span):
    big = jnp.float32(1e30)
    neg = jnp.float32(-1e35)   # strictly below any reachable doubly-masked candidate (~ -3e30)

    st = st_ref[...] - big * (1.0 - cm_ref[...])
    en = en_ref[...] - big * (1.0 - cm_ref[...])
    st_o[...] = st
    en_o[...] = en

    stq = st - big * qm_ref[...]            # packing_mask penalty applies along the start index
    Bt, Sp = st.shape
    lane = jax.lax.broadcasted_iota(jnp.int32, (Bt, Sp), 1)

    row_best = stq + en                     # d = 0: end at the same position
    col_best = en + stq
    for d in range(1, max_span + 1):
        # end shifted left by d: en_d[i] = en[i + d] (invalid for i >= Sp - d)
        en_d = pltpu.roll(en, shift=Sp - d, axis=1)
        en_d = jnp.where(lane < Sp - d, en_d, neg)
        row_best = jnp.maximum(row_best, stq + en_d)
        # start shifted right by d: st_d[j] = stq[j - d] (invalid for j < d)
        st_d = pltpu.roll(stq, shift=d, axis=1)
        st_d = jnp.where(lane >= d, st_d, neg)
        col_best = jnp.maximum(col_best, en + st_d)

    m1 = jnp.max(row_best, axis=1, keepdims=True)
    m2 = jnp.max(col_best, axis=1, keepdims=True)
    yp1_o[...] = jnp.min(jnp.where(row_best >= m1, lane, Sp), axis=1, keepdims=True)
    yp2_o[...] = jnp.min(jnp.where(col_best >= m2, lane, Sp), axis=1, keepdims=True)


def span_predictions(start_raw, end_raw, context_mask, query_mapping, max_span=15):
    B, S = start_raw.shape
    Sp = _round_up(S, 128)
    if Sp != S:
        pad = ((0, 0), (0, Sp - S))
        start_raw = jnp.pad(start_raw, pad)
        end_raw = jnp.pad(end_raw, pad)
        context_mask = jnp.pad(context_mask, pad)     # padded tokens are masked out
        query_mapping = jnp.pad(query_mapping, pad)
    # v7x note: for large B pick Bt so B // Bt >= 2 (both TensorCores busy); blocks must be a
    # multiple of 8 rows or cover the whole batch.
    Bt = 8 if (B % 8 == 0) else B

    kernel = functools.partial(_span_kernel, max_span=max_span)
    start, end, yp1, yp2 = pl.pallas_call(
        kernel,
        out_shape=(
            jax.ShapeDtypeStruct((B, Sp), jnp.float32),
            jax.ShapeDtypeStruct((B, Sp), jnp.float32),
            jax.ShapeDtypeStruct((B, 1), jnp.int32),
            jax.ShapeDtypeStruct((B, 1), jnp.int32),
        ),
        grid=(B // Bt,),
        in_specs=[pl.BlockSpec((Bt, Sp), lambda i: (i, 0))] * 4,
        out_specs=(
            pl.BlockSpec((Bt, Sp), lambda i: (i, 0)),
            pl.BlockSpec((Bt, Sp), lambda i: (i, 0)),
            pl.BlockSpec((Bt, 1), lambda i: (i, 0)),
            pl.BlockSpec((Bt, 1), lambda i: (i, 0)),
        ),
        compiler_params=pltpu.CompilerParams(
            dimension_semantics=("parallel",), vmem_limit_bytes=VMEM_LIMIT),
    )(start_raw, end_raw, context_mask, query_mapping)
    return start[:, :S], end[:, :S], yp1[:, 0], yp2[:, 0]


# ------------------------------------------------------------------
# Parameter construction (deterministic, synthetic).
# ------------------------------------------------------------------
def make_output_layer_params(key, in_dim, out_dim):
    k1, k2 = jax.random.split(key)
    w1 = 0.02 * jax.random.normal(k1, (in_dim, 2 * in_dim), jnp.float32)
    b1 = jnp.zeros((1, 2 * in_dim), jnp.float32)
    g = jnp.ones((1, 2 * in_dim), jnp.float32)
    beta = jnp.zeros((1, 2 * in_dim), jnp.float32)
    w2 = 0.02 * jax.random.normal(k2, (2 * in_dim, out_dim), jnp.float32)
    b2 = jnp.zeros((1, out_dim), jnp.float32)
    return (w1, b1, g, beta, w2, b2)


def make_params(key, input_dim, hidden_dim, num_types=3):
    ks = jax.random.split(key, 6)
    return {
        "w_map": 0.02 * jax.random.normal(ks[0], (input_dim, hidden_dim), jnp.float32),
        "para_mlp": make_output_layer_params(ks[1], 2 * hidden_dim, 2),
        "sent_mlp": make_output_layer_params(ks[2], 2 * hidden_dim, 2),
        "start_mlp": make_output_layer_params(ks[3], hidden_dim, 1),
        "end_mlp": make_output_layer_params(ks[4], hidden_dim, 1),
        "type_mlp": make_output_layer_params(ks[5], hidden_dim, num_types),
    }


# ------------------------------------------------------------------
# ReaderModel forward (eval mode, return_yp=True at the top level).
# ------------------------------------------------------------------
def reader_model_forward(params, batch):
    ce = batch["context_encoding"]                     # (B, S, Din)
    B, S, Din = ce.shape
    H = params["w_map"].shape[1]
    bf16 = jnp.bfloat16

    # --- fused / casted weights (cheap; in a real model this is done once at load time) -------
    s_w1, s_b1, s_g, s_be, s_w2, s_b2 = params["start_mlp"]
    e_w1, e_b1, e_g, e_be, e_w2, e_b2 = params["end_mlp"]
    w1se = jnp.concatenate([s_w1, e_w1], axis=1).astype(bf16)      # (H, 4H)
    b1se = jnp.concatenate([s_b1, e_b1], axis=1)                   # (1, 4H)
    gse = jnp.concatenate([s_g, e_g], axis=1)
    bse = jnp.concatenate([s_be, e_be], axis=1)
    z2h = jnp.zeros((1, 2 * H), jnp.float32)
    w2s_row = jnp.concatenate([s_w2.T, z2h], axis=1)               # (1, 4H), zero outside half
    w2e_row = jnp.concatenate([z2h, e_w2.T], axis=1)
    b2se = jnp.concatenate([s_b2, e_b2], axis=1)                   # (1, 2)

    def prep(p):
        w1, b1, g, beta, w2, b2 = p
        return (w1.astype(bf16), b1, g, beta, w2, b2)              # first-layer weights in bf16

    para_p = prep(params["para_mlp"])
    sent_p = prep(params["sent_mlp"])
    type_p = prep(params["type_mlp"])

    # 1) fused linear_map + start/end OutputLayer heads
    state_flat, se = encode_and_heads(
        ce.reshape(B * S, Din), params["w_map"].astype(bf16),
        w1se, b1se, gse, bse, w2s_row, w2e_row, b2se)
    input_state = state_flat.reshape(B, S, H)                      # (B, S, H) bf16
    se = se.reshape(B, S, 2)
    start_raw, end_raw = se[..., 0], se[..., 1]

    # 2) merged para/sent gather heads + question-type head (single launch)
    #    invalid/padded positions should be encoded as -1 (-> all-zero one-hot row, matching the
    #    reference's zero padding rows).
    para_idx = jnp.stack([batch["para_start_position"], batch["para_end_position"]],
                         axis=1).astype(jnp.int32)[..., None]      # (B, 2, P, 1)
    sent_idx = jnp.stack([batch["sent_start_position"], batch["sent_end_position"]],
                         axis=1).astype(jnp.int32)[..., None]      # (B, 2, Ns, 1)
    para_pred, sent_pred, q_type = gather_and_type(
        input_state, para_idx, sent_idx, para_p, sent_p, type_p)
    q_type = q_type[:, 0, :]                                       # (B, num_types)

    # 3) span predictions (banded, no SxS outer matrix)
    start, end, yp1, yp2 = span_predictions(
        start_raw, end_raw, batch["context_mask"], batch["query_mapping"])

    return start, end, q_type, para_pred, sent_pred, yp1, yp2


# ------------------------------------------------------------------
# Pure-JAX reference of the OutputLayer (for numerical sanity checks).
# ------------------------------------------------------------------
def output_layer_ref(x2d, params):
    w1, b1, g, beta, w2, b2 = params
    hp = jax.lax.Precision.HIGHEST
    h = jnp.maximum(jnp.dot(x2d, w1, precision=hp) + b1, 0.0)
    mu = jnp.mean(h, axis=-1, keepdims=True)
    var = jnp.mean(jnp.square(h - mu), axis=-1, keepdims=True)
    h = (h - mu) * jax.lax.rsqrt(var + 1e-12) * g + beta
    return jnp.dot(h, w2, precision=hp) + b2


if __name__ == "__main__":
    B, S, Din, H = 2, 64, 64, 32
    P, Ns, NUM_TYPES = 4, 8, 3

    key = jax.random.PRNGKey(0)
    kp, kx = jax.random.split(key)
    params = make_params(kp, Din, H, NUM_TYPES)

    context_encoding = jax.random.normal(kx, (B, S, Din), jnp.float32)

    # valid context tokens: first 58; query tokens: first 10
    context_mask = (jnp.arange(S)[None, :] < 58).astype(jnp.float32).repeat(B, axis=0)
    query_mapping = (jnp.arange(S)[None, :] < 10).astype(jnp.float32).repeat(B, axis=0)

    para_starts = jnp.array([10 + 12 * p for p in range(P)], jnp.int32)
    para_ends = para_starts + 11
    sent_starts = jnp.array([10 + 6 * s for s in range(Ns)], jnp.int32)
    sent_ends = sent_starts + 5

    batch = {
        "context_encoding": context_encoding,
        "context_mask": context_mask,
        "query_mapping": query_mapping,
        "para_start_position": jnp.tile(para_starts[None], (B, 1)),
        "para_end_position": jnp.tile(para_ends[None], (B, 1)),
        "sent_start_position": jnp.tile(sent_starts[None], (B, 1)),
        "sent_end_position": jnp.tile(sent_ends[None], (B, 1)),
    }

    outs = jax.block_until_ready(reader_model_forward(params, batch))
    start, end, q_type, para_pred, sent_pred, yp1, yp2 = outs

    # --- numerical sanity checks against a pure-JAX f32 reference ---------------------------
    hp = jax.lax.Precision.HIGHEST
    input_state_ref = jnp.dot(
        context_encoding.reshape(B * S, Din), params["w_map"], precision=hp).reshape(B, S, H)

    q_type_ref = output_layer_ref(input_state_ref[:, 0, :], params["type_mlp"])
    np.testing.assert_allclose(np.asarray(q_type), np.asarray(q_type_ref), rtol=2e-2, atol=2e-2)

    bidx = jnp.arange(B)[:, None]
    ps = input_state_ref[bidx, batch["para_start_position"], :]
    pe = input_state_ref[bidx, batch["para_end_position"], :]
    para_ref = output_layer_ref(
        jnp.concatenate([ps, pe], -1).reshape(B * P, 2 * H), params["para_mlp"]).reshape(B, P, 2)
    np.testing.assert_allclose(np.asarray(para_pred), np.asarray(para_ref), rtol=2e-2, atol=2e-2)

    ss = input_state_ref[bidx, batch["sent_start_position"], :]
    se_ = input_state_ref[bidx, batch["sent_end_position"], :]
    sent_ref = output_layer_ref(
        jnp.concatenate([ss, se_], -1).reshape(B * Ns, 2 * H), params["sent_mlp"]).reshape(B, Ns, 2)
    np.testing.assert_allclose(np.asarray(sent_pred), np.asarray(sent_ref), rtol=2e-2, atol=2e-2)

    # span argmax reference (full outer-matrix formulation, computed from the kernel's logits)
    ii = jnp.arange(S)[:, None]
    jj = jnp.arange(S)[None, :]
    band = ((jj >= ii) & (jj <= ii + 15)).astype(jnp.float32)
    outer = start[:, :, None] + end[:, None, :]
    outer = outer - 1e30 * (1.0 - band)[None] - 1e30 * query_mapping[:, :, None]
    yp1_ref = jnp.argmax(jnp.max(outer, axis=2), axis=1)
    yp2_ref = jnp.argmax(jnp.max(outer, axis=1), axis=1)
    assert (np.asarray(yp1) == np.asarray(yp1_ref)).all()
    assert (np.asarray(yp2) == np.asarray(yp2_ref)).all()

    assert start.shape == (B, S) and end.shape == (B, S)
    assert q_type.shape == (B, NUM_TYPES)
    assert para_pred.shape == (B, P, 2) and sent_pred.shape == (B, Ns, 2)
    assert yp1.shape == (B,) and yp2.shape == (B,)
    print("KERNEL_OK")
</pallas_src>

<mosaic_0001>
module attributes {stable_mosaic.version = 11 : i64} {
  func.func @_encode_heads_kernel(%arg0: i32, %arg1: memref<128x64xf32, #tpu.memory_space<vmem>>, %arg2: memref<64x32xbf16, #tpu.memory_space<vmem>>, %arg3: memref<32x128xbf16, #tpu.memory_space<vmem>>, %arg4: memref<1x128xf32, #tpu.memory_space<vmem>>, %arg5: memref<1x128xf32, #tpu.memory_space<vmem>>, %arg6: memref<1x128xf32, #tpu.memory_space<vmem>>, %arg7: memref<1x128xf32, #tpu.memory_space<vmem>>, %arg8: memref<1x128xf32, #tpu.memory_space<vmem>>, %arg9: memref<1x2xf32, #tpu.memory_space<vmem>>, %arg10: memref<128x32xbf16, #tpu.memory_space<vmem>>, %arg11: memref<128x2xf32, #tpu.memory_space<vmem>>) attributes {dimension_semantics = [#tpu.dimension_semantics<parallel>], iteration_bounds = array<i64: 1>, scalar_prefetch = 0 : i64, scratch_operands = 0 : i64, tpu.core_type = #tpu.core_type<tc>, window_params = [{transform_indices = @transform_0, window_bounds = array<i64: 128, 64>}, {pipeline_mode = #tpu.pipeline_mode<synchronous>, transform_indices = @transform_1, window_bounds = array<i64: 64, 32>}, {pipeline_mode = #tpu.pipeline_mode<synchronous>, transform_indices = @transform_2, window_bounds = array<i64: 32, 128>}, {pipeline_mode = #tpu.pipeline_mode<synchronous>, transform_indices = @transform_3, window_bounds = array<i64: 1, 128>}, {pipeline_mode = #tpu.pipeline_mode<synchronous>, transform_indices = @transform_4, window_bounds = array<i64: 1, 128>}, {pipeline_mode = #tpu.pipeline_mode<synchronous>, transform_indices = @transform_5, window_bounds = array<i64: 1, 128>}, {pipeline_mode = #tpu.pipeline_mode<synchronous>, transform_indices = @transform_6, window_bounds = array<i64: 1, 128>}, {pipeline_mode = #tpu.pipeline_mode<synchronous>, transform_indices = @transform_7, window_bounds = array<i64: 1, 128>}, {pipeline_mode = #tpu.pipeline_mode<synchronous>, transform_indices = @transform_8, window_bounds = array<i64: 1, 2>}, {transform_indices = @transform_9, window_bounds = array<i64: 128, 32>}, {transform_indices = @transform_10, window_bounds = array<i64: 128, 2>}]} {
    %c0 = arith.constant 0 : index
    %c0_0 = arith.constant 0 : index
    %0 = vector.load %arg1[%c0, %c0_0] : memref<128x64xf32, #tpu.memory_space<vmem>>, vector<128x64xf32>
    %1 = arith.truncf %0 : vector<128x64xf32> to vector<128x64xbf16>
    %c0_1 = arith.constant 0 : index
    %c0_2 = arith.constant 0 : index
    %2 = vector.load %arg2[%c0_1, %c0_2] : memref<64x32xbf16, #tpu.memory_space<vmem>>, vector<64x32xbf16>
    %cst = arith.constant dense<0.000000e+00> : vector<128x32xf32>
    %3 = tpu.matmul %1, %2, %cst {dimension_numbers = #tpu.dot_dimension_numbers<[1], [0], [0], [1], [0, 0, 1, 1], [], []>} : vector<128x64xbf16>, vector<64x32xbf16>, vector<128x32xf32> -> vector<128x32xf32>
    %4 = arith.truncf %3 : vector<128x32xf32> to vector<128x32xbf16>
    %c0_3 = arith.constant 0 : index
    %c0_4 = arith.constant 0 : index
    %5 = vector.load %arg10[%c0_3, %c0_4] : memref<128x32xbf16, #tpu.memory_space<vmem>>, vector<128x32xbf16>
    tpu.vector_store %arg10[%c0_3, %c0_4], %4 {strides = array<i32>} : memref<128x32xbf16, #tpu.memory_space<vmem>>, vector<128x32xbf16>,
    %c0_5 = arith.constant 0 : index
    %c0_6 = arith.constant 0 : index
    %6 = vector.load %arg3[%c0_5, %c0_6] : memref<32x128xbf16, #tpu.memory_space<vmem>>, vector<32x128xbf16>
    %cst_7 = arith.constant dense<0.000000e+00> : vector<128x128xf32>
    %7 = tpu.matmul %4, %6, %cst_7 {dimension_numbers = #tpu.dot_dimension_numbers<[1], [0], [0], [1], [0, 0, 1, 1], [], []>} : vector<128x32xbf16>, vector<32x128xbf16>, vector<128x128xf32> -> vector<128x128xf32>
    %c0_8 = arith.constant 0 : index
    %c0_9 = arith.constant 0 : index
    %8 = vector.load %arg4[%c0_8, %c0_9] : memref<1x128xf32, #tpu.memory_space<vmem>>, vector<1x128xf32>
    %9 = vector.broadcast %8 : vector<1x128xf32> to vector<128x128xf32>
    %10 = arith.addf %7, %9 : vector<128x128xf32>
    %cst_10 = arith.constant 0.000000e+00 : f32
    %11 = vector.broadcast %cst_10 : f32 to vector<128x128xf32>
    %12 = arith.maximumf %10, %11 : vector<128x128xf32>
    %13 = tpu.iota {dimensions = array<i32: 1>} : vector<1x128xi32>
    %c64_i32 = arith.constant 64 : i32
    %14 = vector.broadcast %c64_i32 : i32 to vector<1x128xi32>
    %15 = arith.cmpi slt, %13, %14 : vector<1x128xi32>
    %16 = arith.extui %15 : vector<1x128xi1> to vector<1x128xi32>
    %17 = arith.sitofp %16 : vector<1x128xi32> to vector<1x128xf32>
    %cst_11 = arith.constant 1.000000e+00 : f32
    %18 = vector.broadcast %cst_11 : f32 to vector<1x128xf32>
    %19 = arith.subf %18, %17 : vector<1x128xf32>
    %20 = vector.broadcast %17 : vector<1x128xf32> to vector<128x128xf32>
    %21 = arith.mulf %12, %20 : vector<128x128xf32>
    %cst_12 = arith.constant dense<0.000000e+00> : vector<128xf32>
    %22 = vector.multi_reduction <add>, %21, %cst_12 [1] : vector<128x128xf32> to vector<128xf32>
    %23 = vector.shape_cast %22 : vector<128xf32> to vector<128x1xf32>
    %cst_13 = arith.constant 1.562500e-02 : f32
    %24 = vector.broadcast %cst_13 : f32 to vector<128x1xf32>
    %25 = arith.mulf %23, %24 : vector<128x1xf32>
    %26 = vector.broadcast %19 : vector<1x128xf32> to vector<128x128xf32>
    %27 = arith.mulf %12, %26 : vector<128x128xf32>
    %cst_14 = arith.constant dense<0.000000e+00> : vector<128xf32>
    %28 = vector.multi_reduction <add>, %27, %cst_14 [1] : vector<128x128xf32> to vector<128xf32>
    %29 = vector.shape_cast %28 : vector<128xf32> to vector<128x1xf32>
    %cst_15 = arith.constant 1.562500e-02 : f32
    %30 = vector.broadcast %cst_15 : f32 to vector<128x1xf32>
    %31 = arith.mulf %29, %30 : vector<128x1xf32>
    %32 = arith.mulf %12, %12 : vector<128x128xf32>
    %33 = vector.broadcast %17 : vector<1x128xf32> to vector<128x128xf32>
    %34 = arith.mulf %32, %33 : vector<128x128xf32>
    %cst_16 = arith.constant dense<0.000000e+00> : vector<128xf32>
    %35 = vector.multi_reduction <add>, %34, %cst_16 [1] : vector<128x128xf32> to vector<128xf32>
    %36 = vector.shape_cast %35 : vector<128xf32> to vector<128x1xf32>
    %cst_17 = arith.constant 1.562500e-02 : f32
    %37 = vector.broadcast %cst_17 : f32 to vector<128x1xf32>
    %38 = arith.mulf %36, %37 : vector<128x1xf32>
    %39 = arith.mulf %12, %12 : vector<128x128xf32>
    %40 = vector.broadcast %19 : vector<1x128xf32> to vector<128x128xf32>
    %41 = arith.mulf %39, %40 : vector<128x128xf32>
    %cst_18 = arith.constant dense<0.000000e+00> : vector<128xf32>
    %42 = vector.multi_reduction <add>, %41, %cst_18 [1] : vector<128x128xf32> to vector<128xf32>
    %43 = vector.shape_cast %42 : vector<128xf32> to vector<128x1xf32>
    %cst_19 = arith.constant 1.562500e-02 : f32
    %44 = vector.broadcast %cst_19 : f32 to vector<128x1xf32>
    %45 = arith.mulf %43, %44 : vector<128x1xf32>
    %46 = arith.mulf %25, %25 : vector<128x1xf32>
    %47 = arith.subf %38, %46 : vector<128x1xf32>
    %cst_20 = arith.constant 0.000000e+00 : f32
    %48 = vector.broadcast %cst_20 : f32 to vector<128x1xf32>
    %49 = arith.maximumf %47, %48 : vector<128x1xf32>
    %50 = arith.mulf %31, %31 : vector<128x1xf32>
    %51 = arith.subf %45, %50 : vector<128x1xf32>
    %cst_21 = arith.constant 0.000000e+00 : f32
    %52 = vector.broadcast %cst_21 : f32 to vector<128x1xf32>
    %53 = arith.maximumf %51, %52 : vector<128x1xf32>
    %54 = vector.broadcast %25 : vector<128x1xf32> to vector<128x128xf32>
    %55 = vector.broadcast %17 : vector<1x128xf32> to vector<128x128xf32>
    %56 = arith.mulf %54, %55 : vector<128x128xf32>
    %57 = vector.broadcast %31 : vector<128x1xf32> to vector<128x128xf32>
    %58 = vector.broadcast %19 : vector<1x128xf32> to vector<128x128xf32>
    %59 = arith.mulf %57, %58 : vector<128x128xf32>
    %60 = arith.addf %56, %59 : vector<128x128xf32>
    %cst_22 = arith.constant 9.99999996E-13 : f32
    %61 = vector.broadcast %cst_22 : f32 to vector<128x1xf32>
    %62 = arith.addf %49, %61 : vector<128x1xf32>
    %63 = math.rsqrt %62 : vector<128x1xf32>
    %64 = vector.broadcast %63 : vector<128x1xf32> to vector<128x128xf32>
    %65 = vector.broadcast %17 : vector<1x128xf32> to vector<128x128xf32>
    %66 = arith.mulf %64, %65 : vector<128x128xf32>
    %cst_23 = arith.constant 9.99999996E-13 : f32
    %67 = vector.broadcast %cst_23 : f32 to vector<128x1xf32>
    %68 = arith.addf %53, %67 : vector<128x1xf32>
    %69 = math.rsqrt %68 : vector<128x1xf32>
    %70 = vector.broadcast %69 : vector<128x1xf32> to vector<128x128xf32>
    %71 = vector.broadcast %19 : vector<1x128xf32> to vector<128x128xf32>
    %72 = arith.mulf %70, %71 : vector<128x128xf32>
    %73 = arith.addf %66, %72 : vector<128x128xf32>
    %74 = arith.subf %12, %60 : vector<128x128xf32>
    %75 = arith.mulf %74, %73 : vector<128x128xf32>
    %c0_24 = arith.constant 0 : index
    %c0_25 = arith.constant 0 : index
    %76 = vector.load %arg5[%c0_24, %c0_25] : memref<1x128xf32, #tpu.memory_space<vmem>>, vector<1x128xf32>
    %77 = vector.broadcast %76 : vector<1x128xf32> to vector<128x128xf32>
    %78 = arith.mulf %75, %77 : vector<128x128xf32>
    %c0_26 = arith.constant 0 : index
    %c0_27 = arith.constant 0 : index
    %79 = vector.load %arg6[%c0_26, %c0_27] : memref<1x128xf32, #tpu.memory_space<vmem>>, vector<1x128xf32>
    %80 = vector.broadcast %79 : vector<1x128xf32> to vector<128x128xf32>
    %81 = arith.addf %78, %80 : vector<128x128xf32>
    %c0_28 = arith.constant 0 : index
    %c0_29 = arith.constant 0 : index
    %82 = vector.load %arg7[%c0_28, %c0_29] : memref<1x128xf32, #tpu.memory_space<vmem>>, vector<1x128xf32>
    %83 = vector.broadcast %82 : vector<1x128xf32> to vector<128x128xf32>
    %84 = arith.mulf %81, %83 : vector<128x128xf32>
    %cst_30 = arith.constant dense<0.000000e+00> : vector<128xf32>
    %85 = vector.multi_reduction <add>, %84, %cst_30 [1] : vector<128x128xf32> to vector<128xf32>
    %86 = vector.shape_cast %85 : vector<128xf32> to vector<128x1xf32>
    %c0_31 = arith.constant 0 : index
    %c0_32 = arith.constant 0 : index
    %87 = vector.load %arg8[%c0_31, %c0_32] : memref<1x128xf32, #tpu.memory_space<vmem>>, vector<1x128xf32>
    %88 = vector.broadcast %87 : vector<1x128xf32> to vector<128x128xf32>
    %89 = arith.mulf %81, %88 : vector<128x128xf32>
    %cst_33 = arith.constant dense<0.000000e+00> : vector<128xf32>
    %90 = vector.multi_reduction <add>, %89, %cst_33 [1] : vector<128x128xf32> to vector<128xf32>
    %91 = vector.shape_cast %90 : vector<128xf32> to vector<128x1xf32>
    %92 = tpu.concatenate %86, %91 in 1 : vector<128x1xf32>, vector<128x1xf32> -> vector<128x2xf32>
    %c0_34 = arith.constant 0 : index
    %c0_35 = arith.constant 0 : index
    %93 = vector.load %arg9[%c0_34, %c0_35] : memref<1x2xf32, #tpu.memory_space<vmem>>, vector<1x2xf32>
    %94 = vector.broadcast %93 : vector<1x2xf32> to vector<128x2xf32>
    %95 = arith.addf %92, %94 : vector<128x2xf32>
    %c0_36 = arith.constant 0 : index
    %c0_37 = arith.constant 0 : index
    %96 = vector.load %arg11[%c0_36, %c0_37] : memref<128x2xf32, #tpu.memory_space<vmem>>, vector<128x2xf32>
    tpu.vector_store %arg11[%c0_36, %c0_37], %95 {strides = array<i32>} : memref<128x2xf32, #tpu.memory_space<vmem>>, vector<128x2xf32>,
    return
  }
  func.func @transform_0(%arg0: i32) -> (i32, i32) {
    %c0_i32 = arith.constant 0 : i32
    %c0_i32_0 = arith.constant 0 : i32
    return %arg0, %c0_i32 : i32, i32
  }
  func.func @transform_1(%arg0: i32) -> (i32, i32) {
    %c0_i32 = arith.constant 0 : i32
    %c0_i32_0 = arith.constant 0 : i32
    %c0_i32_1 = arith.constant 0 : i32
    return %c0_i32, %c0_i32_0 : i32, i32
  }
  func.func @transform_2(%arg0: i32) -> (i32, i32) {
    %c0_i32 = arith.constant 0 : i32
    %c0_i32_0 = arith.constant 0 : i32
    %c0_i32_1 = arith.constant 0 : i32
    return %c0_i32, %c0_i32_0 : i32, i32
  }
  func.func @transform_3(%arg0: i32) -> (i32, i32) {
    %c0_i32 = arith.constant 0 : i32
    %c0_i32_0 = arith.constant 0 : i32
    %c0_i32_1 = arith.constant 0 : i32
    return %c0_i32, %c0_i32_0 : i32, i32
  }
  func.func @transform_4(%arg0: i32) -> (i32, i32) {
    %c0_i32 = arith.constant 0 : i32
    %c0_i32_0 = arith.constant 0 : i32
    %c0_i32_1 = arith.constant 0 : i32
    return %c0_i32, %c0_i32_0 : i32, i32
  }
  func.func @transform_5(%arg0: i32) -> (i32, i32) {
    %c0_i32 = arith.constant 0 : i32
    %c0_i32_0 = arith.constant 0 : i32
    %c0_i32_1 = arith.constant 0 : i32
    return %c0_i32, %c0_i32_0 : i32, i32
  }
  func.func @transform_6(%arg0: i32) -> (i32, i32) {
    %c0_i32 = arith.constant 0 : i32
    %c0_i32_0 = arith.constant 0 : i32
    %c0_i32_1 = arith.constant 0 : i32
    return %c0_i32, %c0_i32_0 : i32, i32
  }
  func.func @transform_7(%arg0: i32) -> (i32, i32) {
    %c0_i32 = arith.constant 0 : i32
    %c0_i32_0 = arith.constant 0 : i32
    %c0_i32_1 = arith.constant 0 : i32
    return %c0_i32, %c0_i32_0 : i32, i32
  }
  func.func @transform_8(%arg0: i32) -> (i32, i32) {
    %c0_i32 = arith.constant 0 : i32
    %c0_i32_0 = arith.constant 0 : i32
    %c0_i32_1 = arith.constant 0 : i32
    return %c0_i32, %c0_i32_0 : i32, i32
  }
  func.func @transform_9(%arg0: i32) -> (i32, i32) {
    %c0_i32 = arith.constant 0 : i32
    %c0_i32_0 = arith.constant 0 : i32
    return %arg0, %c0_i32 : i32, i32
  }
  func.func @transform_10(%arg0: i32) -> (i32, i32) {
    %c0_i32 = arith.constant 0 : i32
    %c0_i32_0 = arith.constant 0 : i32
    return %arg0, %c0_i32 : i32, i32
  }
}

</mosaic_0001>

<bundles_post_ra>
// kernel: tpu_custom_call.1
= control target key start
LH: loop header
LB: loop body
LE: loop exit
PB: predicated region body
PF: predicated region fallthrough
CT: control target
= control target key end

     0   :  { %vm91_vm0 = vcmask 523264   ;;  %vm277_vm1 = vcmask 257024   ;;  %vm317_vm2 = vcmask 261120   ;;  %vm1177_vm4 = vcmask 7168   ;;  %s2251_s1 = inlined_call_operand.vmem [shape: bf16[64,32], index: 1, kind: input, shape index: {}]   ;;  %s2252_s0 = inlined_call_operand.vmem [shape: f32[128,64], index: 0, kind: input, shape index: {}]   ;;  %s2253_s2 = inlined_call_operand.vmem [shape: bf16[32,128], index: 2, kind: input, shape index: {}]   ;;  %s2254_s9 = inlined_call_operand.vmem [shape: bf16[128,32], index: 9, kind: output, shape index: {0}]   ;;  %s2255_s3 = inlined_call_operand.vmem [shape: f32[1,128], index: 3, kind: input, shape index: {}]   ;;  %s2256_s4 = inlined_call_operand.vmem [shape: f32[1,128], index: 4, kind: input, shape index: {}]   ;;  %s2257_s5 = inlined_call_operand.vmem [shape: f32[1,128], index: 5, kind: input, shape index: {}]   ;;  %s2258_s6 = inlined_call_operand.vmem [shape: f32[1,128], index: 6, kind: input, shape index: {}]   ;;  %s2259_s7 = inlined_call_operand.vmem [shape: f32[1,128], index: 7, kind: input, shape index: {}]   ;;  %s2260_s8 = inlined_call_operand.vmem [shape: f32[1,2], index: 8, kind: input, shape index: {}]   ;;  %s2261_s10 = inlined_call_operand.vmem [shape: f32[128,2], index: 10, kind: output, shape index: {1}]  }
   0x1   :  { %v1370_v0 = vld [vmem:[%s2251_s1 + $0x18] sm:$0xff]   ;;  %v1371_v1 = vld [vmem:[%s2251_s1 + $0x10] sm:$0xff]   ;;  %v1372_v2 = vld [vmem:[%s2251_s1 + $0x8] sm:$0xff]   ;;  %vm1217_vm5 = vcmask 15360  }
   0x2   :  { %1325 = vmatprep.subr.bf16.mxu0 %v1370_v0  ;;  %v35_v3 = vld [vmem:[%s2252_s0] sm:$0xff]  ;;  %v36_v4 = vld [vmem:[%s2252_s0 + $0x8] sm:$0xff]  ;;  %v37_v7 = vld [vmem:[%s2252_s0 + $0x10] sm:$0xff] }
   0x3   :  { %1326 = vmatpush3.bf16.msra.mxu0 %v1370_v0  ;;  %v51_v5 = vpack.c.bf16 %v36_v4, %v35_v3  ;;  %v1373_v6 = vld [vmem:[%s2251_s1] sm:$0xff]   ;;  %v38_v8 = vld [vmem:[%s2252_s0 + $0x18] sm:$0xff]  ;;  %v40_v10 = vld [vmem:[%s2252_s0 + $0x28] sm:$0xff] }
   0x4   :  { %1327 = vmatprep.subr.bf16.mxu0 %v1371_v1  ;;  %v39_v9 = vld [vmem:[%s2252_s0 + $0x20] sm:$0xff]  ;;  %v52_v11 = vpack.c.bf16 %v38_v8, %v37_v7  ;;  %v41_v13 = vld [vmem:[%s2252_s0 + $0x30] sm:$0xff]  ;;  %v42_v14 = vld [vmem:[%s2252_s0 + $0x38] sm:$0xff] }
   0x5   :  { %1333 = vmatprep.mubr.msk.bf16.mxu0 %vm91_vm0, %v51_v5  ;;  %v53_v12 = vpack.c.bf16 %v40_v10, %v39_v9  ;;  %v43_v15 = vld [vmem:[%s2252_s0 + $0x40] sm:$0xff]  ;;  %v44_v16 = vld [vmem:[%s2252_s0 + $0x48] sm:$0xff]  ;;  %v54_v17 = vpack.c.bf16 %v42_v14, %v41_v13  ;;  %v45_v19 = vld [vmem:[%s2252_s0 + $0x50] sm:$0xff]  ;;  %v1440_v9 = vmov 0.0  }
   0x6   :  { %v55_v18 = vpack.c.bf16 %v44_v16, %v43_v15  ;;  %v46_v20 = vld [vmem:[%s2252_s0 + $0x58] sm:$0xff]  ;;  %v47_v21 = vld [vmem:[%s2252_s0 + $0x60] sm:$0xff]  ;;  %v48_v22 = vld [vmem:[%s2252_s0 + $0x68] sm:$0xff] }
   0x7   :  { %1328 = vmatpush3.bf16.msra.mxu0 %v1371_v1  ;;  %v56_v23 = vpack.c.bf16 %v46_v20, %v45_v19  ;;  %v57_v24 = vpack.c.bf16 %v48_v22, %v47_v21  ;;  %v49_v25 = vld [vmem:[%s2252_s0 + $0x70] sm:$0xff]  ;;  %v50_v26 = vld [vmem:[%s2252_s0 + $0x78] sm:$0xff]  ;;  %v1374_v28 = vld [vmem:[%s2253_s2 + $0x8] sm:$0xff]  }
   0x8   :  { %1329 = vmatprep.subr.bf16.mxu0 %v1372_v2  ;;  %v58_v27 = vpack.c.bf16 %v50_v26, %v49_v25  ;;  %1349 = vmatprep.subr.bf16.mxu1 %v1374_v28  ;;  %v1375_v29 = vld [vmem:[%s2253_s2] sm:$0xff]  }
   0x9   :  { %1350 = vmatpush3.bf16.msra.mxu1 %v1374_v28  ;;  %v1645_v8 = vld [vmem:[%s2255_s3] ss:$0 sm:$0xff] }
   0xa   :  { %1351 = vmatprep.subr.bf16.mxu1 %v1375_v29 }
   0xb   :  { %1330 = vmatpush3.bf16.msra.mxu0 %v1372_v2 }
   0xc   :  { %1331 = vmatprep.subr.bf16.mxu0 %v1373_v6 }
   0xd   :  { %1352 = vmatpush3.bf16.msra.mxu1 %v1375_v29 }
   0xf   :  { %1332 = vmatpush3.bf16.msra.mxu0 %v1373_v6  ;;  %v455_v6 = vlaneseq }
  0x11   :  { %v456_v7 = vand.u32 127, %v455_v6 }
  0x12   :  { %1334 = vmatmul.mubr.msk.bf16.vlgmr.msra.gmra.mxu0 %vm91_vm0, %v52_v11 }
  0x13   :  { %1337 = vmatprep.mubr.msk.bf16.mxu0 %vm91_vm0, %v53_v12  ;;  %vm457_vm3 = vcmp.lt.s32.totalorder %v456_v7, 64 }
  0x14   :  { %v1647_v10 = vsel %vm457_vm3, 1.0, %v1440_v9 }
  0x15   :  { %v1651_v13 = vsub.f32 1.0, %v1647_v10 }
  0x1a   :  { %1338 = vmatmul.mubr.msk.bf16.gmra.mxu0 %vm91_vm0, %v54_v17 }
  0x1b   :  { %1341 = vmatprep.mubr.msk.bf16.mxu0 %vm91_vm0, %v55_v18 }
  0x22   :  { %1342 = vmatmul.mubr.msk.bf16.gmra.mxu0 %vm91_vm0, %v56_v23 }
  0x23   :  { %1345 = vmatprep.mubr.msk.bf16.mxu0 %vm91_vm0, %v57_v24 }
  0x2a   :  { %1346 = vmatmul.mubr.msk.bf16.gmra.mxu0 %vm91_vm0, %v58_v27 }
  0xd2   :  { %v1335_v30 = vpop.f32.mrf.mxu0 }
  0xd3   :  { %v1289_v31 = vpack.c.bf16 %v1335_v30, %v1335_v30 }
  0xd4   :  { %v150_v32 = vpop.f32.mrf.mxu0 }
  0xd5   :  { %280 = vst.msk [vmem:[%s2254_s9 + $0x8] sm:$0xf] %vm277_vm1, %v1289_v31  ;;  %v1287_v33 = vpack.c.bf16 %v150_v32, %v150_v32 }
  0xd6   :  { %v1336_v34 = vpop.f32.mrf.mxu0 }
  0xd7   :  { %278 = vst.msk [vmem:[%s2254_s9] sm:$0xf] %vm277_vm1, %v1287_v33  ;;  %v1290_v35 = vpack.c.bf16 %v1336_v34, %v1336_v34  ;;  %v214_v39 = vpack.c.bf16 %v1336_v34, %v1335_v30 }
  0xd8   :  { %v153_v36 = vpop.f32.mrf.mxu0 }
  0xd9   :  { %281 = vst.msk [vmem:[%s2254_s9 + $0xc] sm:$0xf] %vm277_vm1, %v1290_v35  ;;  %v1288_v37 = vpack.c.bf16 %v153_v36, %v153_v36  ;;  %v213_v38 = vpack.c.bf16 %v153_v36, %v150_v32 }
  0xda   :  { %v1339_v40 = vpop.f32.mrf.mxu0 }
  0xdb   :  { %279 = vst.msk [vmem:[%s2254_s9 + $0x4] sm:$0xf] %vm277_vm1, %v1288_v37  ;;  %1353 = vmatprep.mubr.msk.bf16.mxu1 %vm317_vm2, %v213_v38  ;;  %v1293_v41 = vpack.c.bf16 %v1339_v40, %v1339_v40 }
  0xdc   :  { %1354 = vmatmul.mubr.msk.bf16.vlgmr.msra.gmra.mxu1 %vm317_vm2, %v214_v39  ;;  %v166_v42 = vpop.f32.mrf.mxu0 }
  0xdd   :  { %284 = vst.msk [vmem:[%s2254_s9 + $0x18] sm:$0xf] %vm277_vm1, %v1293_v41  ;;  %v1291_v43 = vpack.c.bf16 %v166_v42, %v166_v42 }
  0xde   :  { %v1340_v44 = vpop.f32.mrf.mxu0 }
  0xdf   :  { %282 = vst.msk [vmem:[%s2254_s9 + $0x10] sm:$0xf] %vm277_vm1, %v1291_v43  ;;  %v1294_v45 = vpack.c.bf16 %v1340_v44, %v1340_v44  ;;  %v216_v46 = vpack.c.bf16 %v1340_v44, %v1339_v40 }
  0xe0   :  { %v169_v47 = vpop.f32.mrf.mxu0 }
  0xe1   :  { %285 = vst.msk [vmem:[%s2254_s9 + $0x1c] sm:$0xf] %vm277_vm1, %v1294_v45  ;;  %v215_v48 = vpack.c.bf16 %v169_v47, %v166_v42  ;;  %v1292_v49 = vpack.c.bf16 %v169_v47, %v169_v47 }
  0xe2   :  { %v1343_v50 = vpop.f32.mrf.mxu0 }
  0xe3   :  { %283 = vst.msk [vmem:[%s2254_s9 + $0x14] sm:$0xf] %vm277_vm1, %v1292_v49  ;;  %1357 = vmatprep.mubr.msk.bf16.mxu1 %vm317_vm2, %v215_v48  ;;  %v1297_v51 = vpack.c.bf16 %v1343_v50, %v1343_v50 }
  0xe4   :  { %1358 = vmatmul.mubr.msk.bf16.gmra.mxu1 %vm317_vm2, %v216_v46  ;;  %v182_v52 = vpop.f32.mrf.mxu0 }
  0xe5   :  { %288 = vst.msk [vmem:[%s2254_s9 + $0x28] sm:$0xf] %vm277_vm1, %v1297_v51  ;;  %v1295_v53 = vpack.c.bf16 %v182_v52, %v182_v52 }
  0xe6   :  { %v1344_v54 = vpop.f32.mrf.mxu0 }
  0xe7   :  { %286 = vst.msk [vmem:[%s2254_s9 + $0x20] sm:$0xf] %vm277_vm1, %v1295_v53  ;;  %v1298_v55 = vpack.c.bf16 %v1344_v54, %v1344_v54  ;;  %v218_v56 = vpack.c.bf16 %v1344_v54, %v1343_v50 }
  0xe8   :  { %v185_v57 = vpop.f32.mrf.mxu0 }
  0xe9   :  { %289 = vst.msk [vmem:[%s2254_s9 + $0x2c] sm:$0xf] %vm277_vm1, %v1298_v55  ;;  %v217_v58 = vpack.c.bf16 %v185_v57, %v182_v52  ;;  %v1296_v59 = vpack.c.bf16 %v185_v57, %v185_v57 }
  0xea   :  { %v1347_v60 = vpop.f32.mrf.mxu0 }
  0xeb   :  { %287 = vst.msk [vmem:[%s2254_s9 + $0x24] sm:$0xf] %vm277_vm1, %v1296_v59  ;;  %1361 = vmatprep.mubr.msk.bf16.mxu1 %vm317_vm2, %v217_v58  ;;  %v1301_v61 = vpack.c.bf16 %v1347_v60, %v1347_v60 }
  0xec   :  { %1362 = vmatmul.mubr.msk.bf16.gmra.mxu1 %vm317_vm2, %v218_v56  ;;  %v198_v62 = vpop.f32.mrf.mxu0 }
  0xed   :  { %292 = vst.msk [vmem:[%s2254_s9 + $0x38] sm:$0xf] %vm277_vm1, %v1301_v61  ;;  %v1299_v63 = vpack.c.bf16 %v198_v62, %v198_v62 }
  0xee   :  { %v1348_v0 = vpop.f32.mrf.mxu0 }
  0xef   :  { %290 = vst.msk [vmem:[%s2254_s9 + $0x30] sm:$0xf] %vm277_vm1, %v1299_v63  ;;  %v1302_v1 = vpack.c.bf16 %v1348_v0, %v1348_v0  ;;  %v220_v2 = vpack.c.bf16 %v1348_v0, %v1347_v60 }
  0xf0   :  { %v201_v3 = vpop.f32.mrf.mxu0 }
  0xf1   :  { %293 = vst.msk [vmem:[%s2254_s9 + $0x3c] sm:$0xf] %vm277_vm1, %v1302_v1  ;;  %v219_v4 = vpack.c.bf16 %v201_v3, %v198_v62  ;;  %v1300_v5 = vpack.c.bf16 %v201_v3, %v201_v3 }
  0xf3   :  { %291 = vst.msk [vmem:[%s2254_s9 + $0x34] sm:$0xf] %vm277_vm1, %v1300_v5  ;;  %1365 = vmatprep.mubr.msk.bf16.mxu1 %vm317_vm2, %v219_v4 }
  0xf4   :  { %1366 = vmatmul.mubr.msk.bf16.gmra.mxu1 %vm317_vm2, %v220_v2 }
 0x19c   :  { %v1355_v11 = vpop.f32.mrf.mxu1 }
 0x19d   :  { %v385_v12 = vadd.f32 %v1355_v11, %v1645_v8 }
 0x19e   :  { %v376_v14 = vpop.f32.mrf.mxu1 }
 0x19f   :  { %v1653_v15 = vmax.f32 %v385_v12, 0.0  ;;  %v377_v16 = vadd.f32 %v1645_v8, %v376_v14 }
 0x1a0   :  { %v1356_v17 = vpop.f32.mrf.mxu1 }
 0x1a1   :  { %v1656_v18 = vmax.f32 %v377_v16, 0.0  ;;  %v388_v19 = vadd.f32 %v1356_v17, %v1645_v8  ;;  %v527_v20 = vmul.f32 %v1651_v13, %v1653_v15  ;;  %v463_v21 = vmul.f32 %v1647_v10, %v1653_v15 }
 0x1a2   :  { %v379_v22 = vpop.f32.mrf.mxu1  ;;  %v591_v30 = vmul.f32 %v1653_v15, %v1653_v15 }
 0x1a3   :  { %v1663_v23 = vmax.f32 %v388_v19, 0.0  ;;  %545 = vadd.xlane.f32.xlu0 %v527_v20  ;;  %481 = vadd.xlane.f32.xlu1 %v463_v21  ;;  %v380_v24 = vadd.f32 %v1645_v8, %v379_v22  ;;  %v461_v26 = vmul.f32 %v1647_v10, %v1656_v18  ;;  %v525_v29 = vmul.f32 %v1651_v13, %v1656_v18 }
 0x1a4   :  { %v607_v32 = vmul.f32 %v1647_v10, %v591_v30  ;;  %v1359_v34 = vpop.f32.mrf.mxu1  ;;  %v671_v36 = vmul.f32 %v591_v30, %v1651_v13  ;;  %v589_v37 = vmul.f32 %v1656_v18, %v1656_v18 }
 0x1a5   :  { %v464_v25 = vmul.f32 %v1647_v10, %v1663_v23  ;;  %v1670_v27 = vmax.f32 %v380_v24, 0.0  ;;  %v528_v28 = vmul.f32 %v1651_v13, %v1663_v23  ;;  %v592_v33 = vmul.f32 %v1663_v23, %v1663_v23 }
 0x1a6   :  { %v392_v38 = vpop.f32.mrf.mxu1  ;;  %v605_v40 = vmul.f32 %v1647_v10, %v589_v37  ;;  %v401_v43 = vadd.f32 %v1359_v34, %v1645_v8  ;;  %v669_v46 = vmul.f32 %v589_v37, %v1651_v13 }
 0x1a7   :  { %483 = vadd.xlane.f32.xlu1 %v464_v25  ;;  %477 = vadd.xlane.f32.xlu0 %v461_v26  ;;  %v526_v31 = vmul.f32 %v1651_v13, %v1670_v27  ;;  %v608_v35 = vmul.f32 %v1647_v10, %v592_v33  ;;  %v672_v39 = vmul.f32 %v592_v33, %v1651_v13 }
 0x1a8   :  { %v590_v41 = vmul.f32 %v1670_v27, %v1670_v27  ;;  %v1360_v42 = vpop.f32.mrf.mxu1  ;;  %v1695_v47 = vmax.f32 %v401_v43, 0.0  ;;  %v462_v50 = vmul.f32 %v1647_v10, %v1670_v27  ;;  %v393_v52 = vadd.f32 %v1645_v8, %v392_v38 }
 0x1a9   :  { %v404_v44 = vadd.f32 %v1360_v42, %v1645_v8 }
 0x1aa   :  { %v606_v45 = vmul.f32 %v1647_v10, %v590_v41  ;;  %v670_v49 = vmul.f32 %v590_v41, %v1651_v13  ;;  %v395_v51 = vpop.f32.mrf.mxu1  ;;  %v467_v54 = vmul.f32 %v1647_v10, %v1695_v47  ;;  %v1708_v56 = vmax.f32 %v393_v52, 0.0 }
 0x1ab   :  { %547 = vadd.xlane.f32.xlu1 %v528_v28  ;;  %541 = vadd.xlane.f32.xlu0 %v525_v29  ;;  %v1697_v48 = vmax.f32 %v404_v44, 0.0  ;;  %v396_v53 = vadd.f32 %v1645_v8, %v395_v51  ;;  %v531_v58 = vmul.f32 %v1651_v13, %v1695_v47  ;;  %v595_v1 = vmul.f32 %v1695_v47, %v1695_v47 }
 0x1ac   :  { %v465_v61 = vmul.f32 %v1647_v10, %v1708_v56  ;;  %v529_v63 = vmul.f32 %v1651_v13, %v1708_v56  ;;  %v1363_v2 = vpop.f32.mrf.mxu1  ;;  %v593_v11 = vmul.f32 %v1708_v56, %v1708_v56 }
 0x1ad   :  { %v468_v55 = vmul.f32 %v1647_v10, %v1697_v48  ;;  %v1710_v57 = vmax.f32 %v396_v53, 0.0  ;;  %v532_v59 = vmul.f32 %v1651_v13, %v1697_v48  ;;  %v596_v0 = vmul.f32 %v1697_v48, %v1697_v48 }
 0x1ae   :  { %v611_v4 = vmul.f32 %v1647_v10, %v595_v1  ;;  %v408_v5 = vpop.f32.mrf.mxu1  ;;  %v675_v7 = vmul.f32 %v595_v1, %v1651_v13  ;;  %v417_v14 = vadd.f32 %v1363_v2, %v1645_v8  ;;  %v609_v19 = vmul.f32 %v1647_v10, %v593_v11 }
 0x1af   :  { %543 = vadd.xlane.f32.xlu1 %v526_v31  ;;  %625 = vadd.xlane.f32.xlu0 %v607_v32  ;;  %v466_v60 = vmul.f32 %v1647_v10, %v1710_v57  ;;  %v530_v62 = vmul.f32 %v1651_v13, %v1710_v57  ;;  %v612_v3 = vmul.f32 %v1647_v10, %v596_v0 }
 0x1b0   :  { %v676_v6 = vmul.f32 %v596_v0, %v1651_v13  ;;  %v594_v9 = vmul.f32 %v1710_v57, %v1710_v57  ;;  %v1364_v12 = vpop.f32.mrf.mxu1  ;;  %v1740_v20 = vmax.f32 %v417_v14, 0.0  ;;  %v673_v24 = vmul.f32 %v593_v11, %v1651_v13 }
 0x1b1   :  { %v420_v16 = vadd.f32 %v1364_v12, %v1645_v8  ;;  %v409_v26 = vadd.f32 %v1645_v8, %v408_v5 }
 0x1b2   :  { %v610_v17 = vmul.f32 %v1647_v10, %v594_v9  ;;  %v674_v22 = vmul.f32 %v594_v9, %v1651_v13  ;;  %v411_v25 = vpop.f32.mrf.mxu1  ;;  %v471_v29 = vmul.f32 %v1647_v10, %v1740_v20  ;;  %v535_v33 = vmul.f32 %v1651_v13, %v1740_v20 }
 0x1b3   :  { %627 = vadd.xlane.f32.xlu1 %v608_v35  ;;  %689 = vadd.xlane.f32.xlu0 %v671_v36  ;;  %v1742_v21 = vmax.f32 %v420_v16, 0.0  ;;  %v412_v28 = vadd.f32 %v1645_v8, %v411_v25  ;;  %v1752_v31 = vmax.f32 %v409_v26, 0.0 }
 0x1b4   :  { %v1367_v41 = vpop.f32.mrf.mxu1 }
 0x1b5   :  { %v472_v30 = vmul.f32 %v1647_v10, %v1742_v21  ;;  %v1754_v32 = vmax.f32 %v412_v28, 0.0  ;;  %v536_v34 = vmul.f32 %v1651_v13, %v1742_v21  ;;  %v469_v36 = vmul.f32 %v1647_v10, %v1752_v31 }
 0x1b6   :  { %v533_v38 = vmul.f32 %v1651_v13, %v1752_v31  ;;  %v424_v44 = vpop.f32.mrf.mxu1  ;;  %v433_v52 = vadd.f32 %v1367_v41, %v1645_v8 }
 0x1b7   :  { %691 = vadd.xlane.f32.xlu1 %v672_v39  ;;  %621 = vadd.xlane.f32.xlu0 %v605_v40  ;;  %v470_v35 = vmul.f32 %v1647_v10, %v1754_v32  ;;  %v534_v37 = vmul.f32 %v1651_v13, %v1754_v32  ;;  %v600_v39 = vmul.f32 %v1742_v21, %v1742_v21 }
 0x1b8   :  { %v599_v40 = vmul.f32 %v1740_v20, %v1740_v20  ;;  %v1368_v51 = vpop.f32.mrf.mxu1 }
 0x1b9   :  { %v616_v42 = vmul.f32 %v1647_v10, %v600_v39  ;;  %v436_v53 = vadd.f32 %v1368_v51, %v1645_v8 }
 0x1ba   :  { %v615_v43 = vmul.f32 %v1647_v10, %v599_v40 }
 0x1bb   :  { %623 = vadd.xlane.f32.xlu1 %v606_v45  ;;  %685 = vadd.xlane.f32.xlu0 %v669_v46  ;;  %v680_v45 = vmul.f32 %v600_v39, %v1651_v13  ;;  %v679_v46 = vmul.f32 %v599_v40, %v1651_v13 }
 0x1bf   :  { %687 = vadd.xlane.f32.xlu1 %v670_v49  ;;  %479 = vadd.xlane.f32.xlu0 %v462_v50  ;;  %v598_v49 = vmul.f32 %v1754_v32, %v1754_v32  ;;  %v597_v50 = vmul.f32 %v1752_v31, %v1752_v31 }
 0x1c3   :  { %489 = vadd.xlane.f32.xlu0 %v467_v54  ;;  %491 = vadd.xlane.f32.xlu1 %v468_v55  ;;  %v614_v54 = vmul.f32 %v1647_v10, %v598_v49  ;;  %v613_v55 = vmul.f32 %v1647_v10, %v597_v50 }
 0x1c7   :  { %553 = vadd.xlane.f32.xlu0 %v531_v58  ;;  %555 = vadd.xlane.f32.xlu1 %v532_v59  ;;  %v1784_v58 = vmax.f32 %v433_v52, 0.0  ;;  %v1786_v59 = vmax.f32 %v436_v53, 0.0 }
 0x1c9   :  { %v475_v1 = vmul.f32 %v1647_v10, %v1784_v58  ;;  %v476_v2 = vmul.f32 %v1647_v10, %v1786_v59  ;;  %v539_v5 = vmul.f32 %v1651_v13, %v1784_v58  ;;  %v604_v12 = vmul.f32 %v1786_v59, %v1786_v59 }
 0x1ca   :  { %v603_v14 = vmul.f32 %v1784_v58, %v1784_v58 }
 0x1cb   :  { %487 = vadd.xlane.f32.xlu1 %v466_v60  ;;  %485 = vadd.xlane.f32.xlu0 %v465_v61  ;;  %v678_v60 = vmul.f32 %v598_v49, %v1651_v13  ;;  %v677_v61 = vmul.f32 %v597_v50, %v1651_v13  ;;  %v620_v16 = vmul.f32 %v1647_v10, %v604_v12 }
 0x1cf   :  { %551 = vadd.xlane.f32.xlu1 %v530_v62  ;;  %549 = vadd.xlane.f32.xlu0 %v529_v63  ;;  %v427_v62 = vpop.f32.mrf.mxu1  ;;  %v425_v63 = vadd.f32 %v1645_v8, %v424_v44 }
 0x1d0   :  { %v428_v0 = vadd.f32 %v1645_v8, %v427_v62 }
 0x1d3   :  { %635 = vadd.xlane.f32.xlu1 %v612_v3  ;;  %633 = vadd.xlane.f32.xlu0 %v611_v4  ;;  %v1796_v3 = vmax.f32 %v425_v63, 0.0  ;;  %v1798_v4 = vmax.f32 %v428_v0, 0.0 }
 0x1d5   :  { %v474_v8 = vmul.f32 %v1647_v10, %v1798_v4  ;;  %v538_v9 = vmul.f32 %v1651_v13, %v1798_v4  ;;  %v537_v11 = vmul.f32 %v1651_v13, %v1796_v3 }
 0x1d7   :  { %699 = vadd.xlane.f32.xlu1 %v676_v6  ;;  %697 = vadd.xlane.f32.xlu0 %v675_v7  ;;  %v540_v6 = vmul.f32 %v1651_v13, %v1786_v59  ;;  %v473_v7 = vmul.f32 %v1647_v10, %v1796_v3 }
 0x1db   :  { %631 = vadd.xlane.f32.xlu1 %v610_v17  ;;  %629 = vadd.xlane.f32.xlu0 %v609_v19  ;;  %v619_v17 = vmul.f32 %v1647_v10, %v603_v14  ;;  %v602_v19 = vmul.f32 %v1798_v4, %v1798_v4 }
 0x1dd   :  { %v682_v26 = vmul.f32 %v602_v19, %v1651_v13 }
 0x1df   :  { %695 = vadd.xlane.f32.xlu1 %v674_v22  ;;  %693 = vadd.xlane.f32.xlu0 %v673_v24  ;;  %v601_v22 = vmul.f32 %v1796_v3, %v1796_v3  ;;  %v618_v24 = vmul.f32 %v1647_v10, %v602_v19 }
 0x1e1   :  { %v617_v25 = vmul.f32 %v1647_v10, %v601_v22  ;;  %v681_v28 = vmul.f32 %v601_v22, %v1651_v13 }
 0x1e3   :  { %497 = vadd.xlane.f32.xlu0 %v471_v29  ;;  %499 = vadd.xlane.f32.xlu1 %v472_v30  ;;  %v684_v29 = vmul.f32 %v604_v12, %v1651_v13  ;;  %v683_v30 = vmul.f32 %v603_v14, %v1651_v13 }
 0x1e7   :  { %561 = vadd.xlane.f32.xlu0 %v535_v33  ;;  %563 = vadd.xlane.f32.xlu1 %v536_v34 }
 0x1eb   :  { %495 = vadd.xlane.f32.xlu1 %v470_v35  ;;  %493 = vadd.xlane.f32.xlu0 %v469_v36 }
 0x1ef   :  { %559 = vadd.xlane.f32.xlu1 %v534_v37  ;;  %557 = vadd.xlane.f32.xlu0 %v533_v38 }
 0x1f3   :  { %643 = vadd.xlane.f32.xlu1 %v616_v42  ;;  %641 = vadd.xlane.f32.xlu0 %v615_v43 }
 0x1f7   :  { %707 = vadd.xlane.f32.xlu1 %v680_v45  ;;  %705 = vadd.xlane.f32.xlu0 %v679_v46 }
 0x1fb   :  { %639 = vadd.xlane.f32.xlu1 %v614_v54  ;;  %637 = vadd.xlane.f32.xlu0 %v613_v55 }
 0x1ff   :  { %703 = vadd.xlane.f32.xlu1 %v678_v60  ;;  %701 = vadd.xlane.f32.xlu0 %v677_v61 }
 0x203   :  { %505 = vadd.xlane.f32.xlu0 %v475_v1  ;;  %507 = vadd.xlane.f32.xlu1 %v476_v2 }
 0x207   :  { %569 = vadd.xlane.f32.xlu0 %v539_v5  ;;  %571 = vadd.xlane.f32.xlu1 %v540_v6 }
 0x20b   :  { %503 = vadd.xlane.f32.xlu1 %v474_v8  ;;  %501 = vadd.xlane.f32.xlu0 %v473_v7 }
 0x20f   :  { %567 = vadd.xlane.f32.xlu1 %v538_v9  ;;  %565 = vadd.xlane.f32.xlu0 %v537_v11 }
 0x213   :  { %651 = vadd.xlane.f32.xlu1 %v620_v16  ;;  %649 = vadd.xlane.f32.xlu0 %v619_v17 }
 0x217   :  { %647 = vadd.xlane.f32.xlu1 %v618_v24  ;;  %645 = vadd.xlane.f32.xlu0 %v617_v25 }
 0x21b   :  { %711 = vadd.xlane.f32.xlu1 %v682_v26  ;;  %709 = vadd.xlane.f32.xlu0 %v681_v28 }
 0x21f   :  { %715 = vadd.xlane.f32.xlu1 %v684_v29  ;;  %713 = vadd.xlane.f32.xlu0 %v683_v30 }
 0x22c   :  { %v546_v33 = vpop.xlane.xlu0 %545  ;;  %v482_v34 = vpop.xlane.xlu1 %481 }
 0x22d   :  { %v1828_v39 = vmul.f32 0.015625, %v482_v34  ;;  %v575_v42 = vmul.f32 0.015625, %v546_v33 }
 0x22f   :  { %v735_v45 = vmul.f32 %v1828_v39, %v1828_v39  ;;  %v783_v53 = vmul.f32 %v575_v42, %v575_v42 }
 0x230   :  { %v484_v35 = vpop.xlane.xlu1 %483  ;;  %v478_v36 = vpop.xlane.xlu0 %477 }
 0x231   :  { %v1830_v43 = vmul.f32 0.015625, %v484_v35  ;;  %v1834_v46 = vmul.f32 0.015625, %v478_v36 }
 0x233   :  { %v736_v54 = vmul.f32 %v1830_v43, %v1830_v43  ;;  %v733_v0 = vmul.f32 %v1834_v46, %v1834_v46 }
 0x234   :  { %v548_v37 = vpop.xlane.xlu1 %547  ;;  %v542_v38 = vpop.xlane.xlu0 %541 }
 0x235   :  { %v1836_v49 = vmul.f32 0.015625, %v548_v37  ;;  %v573_v12 = vmul.f32 0.015625, %v542_v38 }
 0x237   :  { %v784_v1 = vmul.f32 %v1836_v49, %v1836_v49  ;;  %v781_v29 = vmul.f32 %v573_v12, %v573_v12 }
 0x238   :  { %v544_v40 = vpop.xlane.xlu1 %543  ;;  %v626_v41 = vpop.xlane.xlu0 %625 }
 0x239   :  { %v655_v44 = vmul.f32 0.015625, %v626_v41  ;;  %v574_v25 = vmul.f32 0.015625, %v544_v40 }
 0x23b   :  { %v751_v50 = vsub.f32 %v655_v44, %v735_v45  ;;  %v782_v38 = vmul.f32 %v574_v25, %v574_v25 }
 0x23c   :  { %v628_v51 = vpop.xlane.xlu1 %627  ;;  %v690_v52 = vpop.xlane.xlu0 %689 }
 0x23d   :  { %v656_v55 = vmul.f32 0.015625, %v628_v51  ;;  %v719_v60 = vmul.f32 0.015625, %v690_v52  ;;  %v767_v61 = vmax.f32 %v751_v50, 0.0 }
 0x23f   :  { %v752_v62 = vsub.f32 %v656_v55, %v736_v54  ;;  %v799_v63 = vsub.f32 %v719_v60, %v783_v53  ;;  %v879_v2 = vadd.f32 1e-12, %v767_v61  ;;  %v847_v61 = vmul.f32 %v575_v42, %v1651_v13 }
 0x240   :  { %v692_v5 = vpop.xlane.xlu1 %691  ;;  %v622_v6 = vpop.xlane.xlu0 %621 }
 0x241   :  { %v768_v8 = vmax.f32 %v752_v62, 0.0  ;;  %v815_v7 = vmax.f32 %v799_v63, 0.0  ;;  %v720_v9 = vmul.f32 0.015625, %v692_v5  ;;  %v653_v11 = vmul.f32 0.015625, %v622_v6 }
 0x242   :  { %1376 = vrsqrt.f32 %v879_v2  ;;  %v831_v62 = vmul.f32 %v1647_v10, %v1828_v39  ;;  %v832_v39 = vmul.f32 %v1647_v10, %v1830_v43  ;;  %v1864_v43 = vld [vmem:[%s2256_s4] ss:$0 sm:$0xff] }
 0x243   :  { %v927_v14 = vadd.f32 1e-12, %v815_v7  ;;  %v800_v16 = vsub.f32 %v720_v9, %v784_v1  ;;  %v749_v17 = vsub.f32 %v653_v11, %v733_v0  ;;  %v880_v19 = vadd.f32 1e-12, %v768_v8 }
 0x244   :  { %v624_v22 = vpop.xlane.xlu1 %623  ;;  %v686_v24 = vpop.xlane.xlu0 %685  ;;  %v863_v8 = vadd.f32 %v847_v61, %v831_v62  ;;  %v848_v7 = vmul.f32 %v1836_v49, %v1651_v13  ;;  %v845_v11 = vmul.f32 %v573_v12, %v1651_v13  ;;  %v829_v49 = vmul.f32 %v1647_v10, %v1834_v46 }
 0x245   :  { %v816_v26 = vmax.f32 %v800_v16, 0.0  ;;  %v765_v28 = vmax.f32 %v749_v17, 0.0  ;;  %1378 = vrsqrt.f32 %v927_v14  ;;  %v717_v30 = vmul.f32 0.015625, %v686_v24 }
 0x246   :  { %1380 = vrsqrt.f32 %v880_v19  ;;  %v654_v50 = vmul.f32 0.015625, %v624_v22  ;;  %v846_v24 = vmul.f32 %v574_v25, %v1651_v13  ;;  %v991_v12 = vsub.f32 %v1653_v15, %v863_v8  ;;  %v1903_v8 = vld [vmem:[%s2259_s7] ss:$0 sm:$0xff] }
 0x247   :  { %v928_v33 = vadd.f32 1e-12, %v816_v26  ;;  %v877_v34 = vadd.f32 1e-12, %v765_v28  ;;  %v797_v35 = vsub.f32 %v717_v30, %v781_v29  ;;  %v864_v28 = vadd.f32 %v848_v7, %v832_v39 }
 0x248   :  { %v688_v36 = vpop.xlane.xlu1 %687  ;;  %v480_v37 = vpop.xlane.xlu0 %479  ;;  %v861_v30 = vadd.f32 %v845_v11, %v829_v49 }
 0x249   :  { %1382 = vrsqrt.f32 %v928_v33  ;;  %v718_v41 = vmul.f32 0.015625, %v688_v36  ;;  %v510_v44 = vmul.f32 0.015625, %v480_v37  ;;  %v813_v45 = vmax.f32 %v797_v35, 0.0 }
 0x24a   :  { %1384 = vrsqrt.f32 %v877_v34 }
 0x24b   :  { %v798_v51 = vsub.f32 %v718_v41, %v782_v38  ;;  %v734_v52 = vmul.f32 %v510_v44, %v510_v44  ;;  %v925_v40 = vadd.f32 1e-12, %v813_v45  ;;  %v830_v42 = vmul.f32 %v1647_v10, %v510_v44  ;;  %v1875_v41 = vld [vmem:[%s2257_s5] ss:$0 sm:$0xff] }
 0x24c   :  { %v490_v53 = vpop.xlane.xlu0 %489  ;;  %v492_v54 = vpop.xlane.xlu1 %491  ;;  %v992_v44 = vsub.f32 %v1663_v23, %v864_v28 }
 0x24d   :  { %v814_v55 = vmax.f32 %v798_v51, 0.0  ;;  %v750_v60 = vsub.f32 %v654_v50, %v734_v52  ;;  %1386 = vrsqrt.f32 %v925_v40  ;;  %v1859_v33 = vadd.f32 %v846_v24, %v830_v42 }
 0x24e   :  { %v1868_v38 = vmul.f32 0.015625, %v490_v53  ;;  %v1870_v15 = vmul.f32 0.015625, %v492_v54  ;;  %v989_v40 = vsub.f32 %v1656_v18, %v861_v30 }
 0x24f   :  { %v926_v63 = vadd.f32 1e-12, %v814_v55  ;;  %v766_v0 = vmax.f32 %v750_v60, 0.0  ;;  %v1377_v5 = vpop.eup %1376  ;;  %v990_v53 = vsub.f32 %v1670_v27, %v1859_v33  ;;  %v1891_v60 = vld [vmem:[%s2258_s6] ss:$0 sm:$0xff] }
 0x250   :  { %v554_v1 = vpop.xlane.xlu0 %553  ;;  %v556_v2 = vpop.xlane.xlu1 %555  ;;  %v911_v17 = vmul.f32 %v1377_v5, %v1647_v10 }
 0x251   :  { %v878_v6 = vadd.f32 1e-12, %v766_v0  ;;  %1388 = vrsqrt.f32 %v926_v63  ;;  %v1878_v45 = vmul.f32 0.015625, %v554_v1  ;;  %v1884_v54 = vmul.f32 0.015625, %v556_v2 }
 0x252   :  { %v1379_v9 = vpop.eup %1378  ;;  %v739_v1 = vmul.f32 %v1868_v38, %v1868_v38  ;;  %v740_v2 = vmul.f32 %v1870_v15, %v1870_v15 }
 0x253   :  { %1390 = vrsqrt.f32 %v878_v6  ;;  %v959_v19 = vmul.f32 %v1379_v9, %v1651_v13  ;;  %v1381_v22 = vpop.eup %1380  ;;  %v787_v7 = vmul.f32 %v1878_v45, %v1878_v45 }
 0x254   :  { %v488_v14 = vpop.xlane.xlu1 %487  ;;  %v486_v16 = vpop.xlane.xlu0 %485  ;;  %v912_v46 = vmul.f32 %v1381_v22, %v1647_v10 }
 0x255   :  { %v975_v29 = vadd.f32 %v959_v19, %v911_v17  ;;  %v1886_v55 = vmul.f32 0.015625, %v488_v14  ;;  %v788_v14 = vmul.f32 %v1884_v54, %v1884_v54  ;;  %v1911_v17 = vmul.f32 0.015625, %v486_v16 }
 0x256   :  { %v1383_v26 = vpop.eup %1382 }
 0x257   :  { %v1007_v36 = vmul.f32 %v991_v12, %v975_v29  ;;  %v960_v25 = vmul.f32 %v1383_v26, %v1651_v13  ;;  %v1385_v37 = vpop.eup %1384  ;;  %v738_v24 = vmul.f32 %v1886_v55, %v1886_v55 }
 0x258   :  { %v552_v34 = vpop.xlane.xlu1 %551  ;;  %v550_v35 = vpop.xlane.xlu0 %549  ;;  %v909_v0 = vmul.f32 %v1385_v37, %v1647_v10 }
 0x259   :  { %v1030_v50 = vmul.f32 %v1864_v43, %v1007_v36  ;;  %v976_v51 = vadd.f32 %v960_v25, %v912_v46 }
 0x25a   :  { %v1387_v52 = vpop.eup %1386 }
 0x25b   :  { %v1053_v62 = vadd.f32 %v1875_v41, %v1030_v50  ;;  %v1008_v63 = vmul.f32 %v992_v44, %v976_v51  ;;  %v957_v18 = vmul.f32 %v1387_v52, %v1651_v13  ;;  %v1921_v52 = vmul.f32 0.015625, %v552_v34 }
 0x25c   :  { %v636_v23 = vpop.xlane.xlu1 %635  ;;  %v634_v61 = vpop.xlane.xlu0 %633 }
 0x25d   :  { %v660_v5 = vmul.f32 0.015625, %v636_v23  ;;  %v659_v6 = vmul.f32 0.015625, %v634_v61  ;;  %v1076_v9 = vmul.f32 %v1891_v60, %v1053_v62  ;;  %v1031_v11 = vmul.f32 %v1864_v43, %v1008_v63 }
 0x25e   :  { %v973_v42 = vadd.f32 %v957_v18, %v909_v0  ;;  %v1389_v39 = vpop.eup %1388  ;;  %v1131_v29 = vmul.f32 %v1903_v8, %v1053_v62  ;;  %v1923_v0 = vmul.f32 0.015625, %v550_v35 }
 0x25f   :  { %v756_v19 = vsub.f32 %v660_v5, %v740_v2  ;;  %v755_v22 = vsub.f32 %v659_v6, %v739_v1  ;;  %1094 = vadd.xlane.f32.xlu0 %v1076_v9  ;;  %v1054_v28 = vadd.f32 %v1875_v41, %v1031_v11  ;;  %v958_v51 = vmul.f32 %v1389_v39, %v1651_v13 }
 0x260   :  { %v1391_v49 = vpop.eup %1390  ;;  %v700_v26 = vpop.xlane.xlu1 %699  ;;  %v1005_v30 = vmul.f32 %v989_v40, %v973_v42  ;;  %v737_v5 = vmul.f32 %v1911_v17, %v1911_v17 }
 0x261   :  { %v698_v12 = vpop.xlane.xlu0 %697  ;;  %v772_v36 = vmax.f32 %v756_v19, 0.0  ;;  %v771_v46 = vmax.f32 %v755_v22, 0.0  ;;  %v724_v25 = vmul.f32 0.015625, %v700_v26  ;;  %v1077_v16 = vmul.f32 %v1891_v60, %v1054_v28 }
 0x262   :  { %v723_v37 = vmul.f32 0.015625, %v698_v12  ;;  %v1028_v44 = vmul.f32 %v1864_v43, %v1005_v30  ;;  %v910_v50 = vmul.f32 %v1391_v49, %v1647_v10  ;;  %v786_v22 = vmul.f32 %v1921_v52, %v1921_v52 }
 0x263   :  { %v884_v23 = vadd.f32 1e-12, %v772_v36  ;;  %v804_v61 = vsub.f32 %v724_v25, %v788_v14  ;;  %v883_v40 = vadd.f32 1e-12, %v771_v46  ;;  %1096 = vadd.xlane.f32.xlu1 %v1077_v16  ;;  %1149 = vadd.xlane.f32.xlu0 %v1131_v29  ;;  %v785_v49 = vmul.f32 %v1923_v0, %v1923_v0 }
 0x264   :  { %v803_v63 = vsub.f32 %v723_v37, %v787_v7  ;;  %v632_v62 = vpop.xlane.xlu1 %631  ;;  %v1051_v1 = vadd.f32 %v1875_v41, %v1028_v44  ;;  %v974_v2 = vadd.f32 %v958_v51, %v910_v50  ;;  %v1132_v7 = vmul.f32 %v1903_v8, %v1054_v28 }
 0x265   :  { %v630_v18 = vpop.xlane.xlu0 %629  ;;  %v820_v6 = vmax.f32 %v804_v61, 0.0  ;;  %v658_v34 = vmul.f32 0.015625, %v632_v62  ;;  %1392 = vrsqrt.f32 %v884_v23 }
 0x266   :  { %v819_v9 = vmax.f32 %v803_v63, 0.0  ;;  %v657_v11 = vmul.f32 0.015625, %v630_v18  ;;  %v1074_v35 = vmul.f32 %v1891_v60, %v1051_v1  ;;  %v1006_v19 = vmul.f32 %v990_v53, %v974_v2 }
 0x267   :  { %v932_v42 = vadd.f32 1e-12, %v820_v6  ;;  %v754_v14 = vsub.f32 %v658_v34, %v738_v24  ;;  %1394 = vrsqrt.f32 %v883_v40  ;;  %1151 = vadd.xlane.f32.xlu1 %v1132_v7  ;;  %v1129_v27 = vmul.f32 %v1903_v8, %v1051_v1 }
 0x268   :  { %v931_v39 = vadd.f32 1e-12, %v819_v9  ;;  %v753_v26 = vsub.f32 %v657_v11, %v737_v5  ;;  %1090 = vadd.xlane.f32.xlu0 %v1074_v35  ;;  %v696_v12 = vpop.xlane.xlu1 %695  ;;  %v1029_v33 = vmul.f32 %v1864_v43, %v1006_v19  ;;  %v851_v1 = vmul.f32 %v1878_v45, %v1651_v13 }
 0x269   :  { %v694_v28 = vpop.xlane.xlu0 %693  ;;  %1396 = vrsqrt.f32 %v932_v42  ;;  %v770_v29 = vmax.f32 %v754_v14, 0.0  ;;  %v722_v30 = vmul.f32 0.015625, %v696_v12  ;;  %v852_v2 = vmul.f32 %v1884_v54, %v1651_v13 }
 0x26a   :  { %v721_v24 = vmul.f32 0.015625, %v694_v28  ;;  %1398 = vrsqrt.f32 %v931_v39  ;;  %v769_v36 = vmax.f32 %v753_v26, 0.0  ;;  %v1052_v50 = vadd.f32 %v1875_v41, %v1029_v33 }
 0x26b   :  { %v882_v53 = vadd.f32 1e-12, %v770_v29  ;;  %v802_v46 = vsub.f32 %v722_v30, %v786_v22  ;;  %v835_v9 = vmul.f32 %v1647_v10, %v1868_v38  ;;  %v836_v34 = vmul.f32 %v1647_v10, %v1870_v15 }
 0x26c   :  { %v801_v25 = vsub.f32 %v721_v24, %v785_v49  ;;  %v881_v37 = vadd.f32 1e-12, %v769_v36  ;;  %1145 = vadd.xlane.f32.xlu0 %v1129_v27  ;;  %v500_v44 = vpop.xlane.xlu1 %499  ;;  %v1075_v61 = vmul.f32 %v1891_v60, %v1052_v50  ;;  %v1130_v5 = vmul.f32 %v1903_v8, %v1052_v50 }
 0x26d   :  { %v498_v16 = vpop.xlane.xlu0 %497  ;;  %v818_v51 = vmax.f32 %v802_v46, 0.0  ;;  %1400 = vrsqrt.f32 %v882_v53  ;;  %v850_v11 = vmul.f32 %v1921_v52, %v1651_v13  ;;  %v849_v45 = vmul.f32 %v1923_v0, %v1651_v13 }
 0x26e   :  { %v817_v23 = vmax.f32 %v801_v25, 0.0  ;;  %1402 = vrsqrt.f32 %v881_v37  ;;  %1092 = vadd.xlane.f32.xlu1 %v1075_v61  ;;  %v867_v42 = vadd.f32 %v851_v1, %v835_v9  ;;  %v868_v39 = vadd.f32 %v852_v2, %v836_v34 }
 0x26f   :  { %v930_v63 = vadd.f32 1e-12, %v818_v51  ;;  %v834_v14 = vmul.f32 %v1647_v10, %v1886_v55  ;;  %v833_v38 = vmul.f32 %v1647_v10, %v1911_v17  ;;  %v1962_v49 = vmul.f32 0.015625, %v498_v16 }
 0x270   :  { %v929_v40 = vadd.f32 1e-12, %v817_v23  ;;  %v564_v18 = vpop.xlane.xlu1 %563  ;;  %v1964_v0 = vmul.f32 0.015625, %v500_v44  ;;  %v995_v30 = vsub.f32 %v1695_v47, %v867_v42  ;;  %v996_v24 = vsub.f32 %v1697_v48, %v868_v39 }
 0x271   :  { %v562_v62 = vpop.xlane.xlu0 %561  ;;  %1404 = vrsqrt.f32 %v930_v63  ;;  %v1958_v22 = vadd.f32 %v850_v11, %v834_v14  ;;  %v1960_v52 = vadd.f32 %v849_v45, %v833_v38  ;;  %v1974_v27 = vmul.f32 0.015625, %v564_v18 }
 0x272   :  { %1406 = vrsqrt.f32 %v929_v40  ;;  %v1393_v6 = vpop.eup %1392  ;;  %1147 = vadd.xlane.f32.xlu1 %v1130_v5  ;;  %v1972_v36 = vmul.f32 0.015625, %v562_v62  ;;  %v743_v47 = vmul.f32 %v1962_v49, %v1962_v49  ;;  %v744_v48 = vmul.f32 %v1964_v0, %v1964_v0 }
 0x273   :  { %v916_v28 = vmul.f32 %v1393_v6, %v1647_v10  ;;  %v994_v37 = vsub.f32 %v1710_v57, %v1958_v22  ;;  %v993_v16 = vsub.f32 %v1708_v56, %v1960_v52  ;;  %v792_v57 = vmul.f32 %v1974_v27, %v1974_v27 }
 0x274   :  { %v496_v7 = vpop.xlane.xlu1 %495  ;;  %v1395_v35 = vpop.eup %1394  ;;  %v791_v40 = vmul.f32 %v1972_v36, %v1972_v36 }
 0x275   :  { %v494_v54 = vpop.xlane.xlu0 %493  ;;  %v915_v55 = vmul.f32 %v1395_v35, %v1647_v10  ;;  %v1976_v33 = vmul.f32 0.015625, %v496_v7 }
 0x276   :  { %v1397_v19 = vpop.eup %1396  ;;  %v1978_v53 = vmul.f32 0.015625, %v494_v54 }
 0x277   :  { %v1399_v15 = vpop.eup %1398  ;;  %v964_v29 = vmul.f32 %v1397_v19, %v1651_v13  ;;  %v742_v1 = vmul.f32 %v1976_v33, %v1976_v33 }
 0x278   :  { %v560_v26 = vpop.xlane.xlu1 %559  ;;  %v963_v17 = vmul.f32 %v1399_v15, %v1651_v13  ;;  %v741_v2 = vmul.f32 %v1978_v53, %v1978_v53 }
 0x279   :  { %v558_v12 = vpop.xlane.xlu0 %557  ;;  %v980_v46 = vadd.f32 %v964_v29, %v916_v28  ;;  %v1998_v34 = vmul.f32 0.015625, %v560_v26 }
 0x27a   :  { %v979_v25 = vadd.f32 %v963_v17, %v915_v55  ;;  %v1401_v44 = vpop.eup %1400  ;;  %v2000_v11 = vmul.f32 0.015625, %v558_v12 }
 0x27b   :  { %v1012_v23 = vmul.f32 %v996_v24, %v980_v46  ;;  %v1403_v63 = vpop.eup %1402  ;;  %v914_v28 = vmul.f32 %v1401_v44, %v1647_v10  ;;  %v790_v55 = vmul.f32 %v1998_v34, %v1998_v34 }
 0x27c   :  { %v644_v50 = vpop.xlane.xlu1 %643  ;;  %v1011_v61 = vmul.f32 %v995_v30, %v979_v25  ;;  %v913_v29 = vmul.f32 %v1403_v63, %v1647_v10  ;;  %v789_v46 = vmul.f32 %v2000_v11, %v2000_v11 }
 0x27d   :  { %v642_v51 = vpop.xlane.xlu0 %641  ;;  %v664_v62 = vmul.f32 0.015625, %v644_v50  ;;  %v1035_v5 = vmul.f32 %v1864_v43, %v1012_v23 }
 0x27e   :  { %v663_v56 = vmul.f32 0.015625, %v642_v51  ;;  %v1405_v18 = vpop.eup %1404  ;;  %v1034_v6 = vmul.f32 %v1864_v43, %v1011_v61 }
 0x27f   :  { %v1407_v9 = vpop.eup %1406  ;;  %v760_v45 = vsub.f32 %v664_v62, %v744_v48  ;;  %v1058_v42 = vadd.f32 %v1875_v41, %v1035_v5  ;;  %v962_v14 = vmul.f32 %v1405_v18, %v1651_v13 }
 0x280   :  { %v759_v7 = vsub.f32 %v663_v56, %v743_v47  ;;  %v708_v54 = vpop.xlane.xlu1 %707  ;;  %v1057_v39 = vadd.f32 %v1875_v41, %v1034_v6  ;;  %v961_v38 = vmul.f32 %v1407_v9, %v1651_v13 }
 0x281   :  { %v706_v35 = vpop.xlane.xlu0 %705  ;;  %v776_v19 = vmax.f32 %v760_v45, 0.0  ;;  %v728_v22 = vmul.f32 0.015625, %v708_v54  ;;  %v1081_v26 = vmul.f32 %v1891_v60, %v1058_v42  ;;  %v978_v50 = vadd.f32 %v962_v14, %v914_v28 }
 0x282   :  { %v775_v15 = vmax.f32 %v759_v7, 0.0  ;;  %v727_v52 = vmul.f32 0.015625, %v706_v35  ;;  %v1080_v12 = vmul.f32 %v1891_v60, %v1057_v39  ;;  %v977_v51 = vadd.f32 %v961_v38, %v913_v29 }
 0x283   :  { %v888_v17 = vadd.f32 1e-12, %v776_v19  ;;  %v808_v30 = vsub.f32 %v728_v22, %v792_v57  ;;  %1104 = vadd.xlane.f32.xlu1 %v1081_v26  ;;  %v1136_v63 = vmul.f32 %v1903_v8, %v1058_v42  ;;  %v1135_v56 = vmul.f32 %v1903_v8, %v1057_v39 }
 0x284   :  { %v807_v24 = vsub.f32 %v727_v52, %v791_v40  ;;  %v887_v25 = vadd.f32 1e-12, %v775_v15  ;;  %1102 = vadd.xlane.f32.xlu0 %v1080_v12  ;;  %v640_v47 = vpop.xlane.xlu1 %639  ;;  %v1010_v57 = vmul.f32 %v994_v37, %v978_v50  ;;  %v1009_v40 = vmul.f32 %v993_v16, %v977_v51 }
 0x285   :  { %v638_v48 = vpop.xlane.xlu0 %637  ;;  %v824_v23 = vmax.f32 %v808_v30, 0.0  ;;  %v662_v61 = vmul.f32 0.015625, %v640_v47  ;;  %1408 = vrsqrt.f32 %v888_v17  ;;  %v855_v47 = vmul.f32 %v1972_v36, %v1651_v13 }
 0x286   :  { %v823_v44 = vmax.f32 %v807_v24, 0.0  ;;  %v661_v62 = vmul.f32 0.015625, %v638_v48  ;;  %1410 = vrsqrt.f32 %v887_v25  ;;  %v1033_v54 = vmul.f32 %v1864_v43, %v1010_v57 }
 0x287   :  { %v936_v18 = vadd.f32 1e-12, %v824_v23  ;;  %v758_v6 = vsub.f32 %v662_v61, %v742_v1  ;;  %1159 = vadd.xlane.f32.xlu1 %v1136_v63  ;;  %v1032_v35 = vmul.f32 %v1864_v43, %v1009_v40  ;;  %v856_v48 = vmul.f32 %v1974_v27, %v1651_v13 }
 0x288   :  { %v935_v5 = vadd.f32 1e-12, %v823_v44  ;;  %v757_v9 = vsub.f32 %v661_v62, %v741_v2  ;;  %1157 = vadd.xlane.f32.xlu0 %v1135_v56  ;;  %v704_v45 = vpop.xlane.xlu1 %703  ;;  %v1056_v16 = vadd.f32 %v1875_v41, %v1033_v54  ;;  %v854_v50 = vmul.f32 %v1998_v34, %v1651_v13 }
 0x289   :  { %v702_v7 = vpop.xlane.xlu0 %701  ;;  %1412 = vrsqrt.f32 %v936_v18  ;;  %v774_v42 = vmax.f32 %v758_v6, 0.0  ;;  %v726_v14 = vmul.f32 0.015625, %v704_v45  ;;  %v1055_v1 = vadd.f32 %v1875_v41, %v1032_v35 }
 0x28a   :  { %v725_v39 = vmul.f32 0.015625, %v702_v7  ;;  %1414 = vrsqrt.f32 %v935_v5  ;;  %v773_v37 = vmax.f32 %v757_v9, 0.0  ;;  %v1079_v22 = vmul.f32 %v1891_v60, %v1056_v16 }
 0x28b   :  { %v886_v38 = vadd.f32 1e-12, %v774_v42  ;;  %v806_v2 = vsub.f32 %v726_v14, %v790_v55  ;;  %v1078_v52 = vmul.f32 %v1891_v60, %v1055_v1  ;;  %v1134_v24 = vmul.f32 %v1903_v8, %v1056_v16 }
 0x28c   :  { %v805_v19 = vsub.f32 %v725_v39, %v789_v46  ;;  %v885_v15 = vadd.f32 1e-12, %v773_v37  ;;  %v508_v12 = vpop.xlane.xlu1 %507  ;;  %1100 = vadd.xlane.f32.xlu1 %v1079_v22  ;;  %v1133_v55 = vmul.f32 %v1903_v8, %v1055_v1  ;;  %v853_v51 = vmul.f32 %v2000_v11, %v1651_v13 }
 0x28d   :  { %v506_v26 = vpop.xlane.xlu0 %505  ;;  %v822_v28 = vmax.f32 %v806_v2, 0.0  ;;  %1098 = vadd.xlane.f32.xlu0 %v1078_v52  ;;  %1416 = vrsqrt.f32 %v886_v38  ;;  %v839_v44 = vmul.f32 %v1647_v10, %v1962_v49  ;;  %v840_v61 = vmul.f32 %v1647_v10, %v1964_v0 }
 0x28e   :  { %v821_v29 = vmax.f32 %v805_v19, 0.0  ;;  %1418 = vrsqrt.f32 %v885_v15  ;;  %v838_v27 = vmul.f32 %v1647_v10, %v1976_v33  ;;  %v837_v56 = vmul.f32 %v1647_v10, %v1978_v53 }
 0x28f   :  { %v934_v17 = vadd.f32 1e-12, %v822_v28  ;;  %v871_v57 = vadd.f32 %v855_v47, %v839_v44  ;;  %v872_v40 = vadd.f32 %v856_v48, %v840_v61  ;;  %v2044_v49 = vmul.f32 0.015625, %v506_v26 }
 0x290   :  { %v933_v30 = vadd.f32 1e-12, %v821_v29  ;;  %v572_v25 = vpop.xlane.xlu1 %571  ;;  %1155 = vadd.xlane.f32.xlu1 %v1134_v24  ;;  %v2040_v18 = vadd.f32 %v854_v50, %v838_v27  ;;  %v2042_v5 = vadd.f32 %v853_v51, %v837_v56  ;;  %v2046_v0 = vmul.f32 0.015625, %v508_v12 }
 0x291   :  { %v570_v46 = vpop.xlane.xlu0 %569  ;;  %1420 = vrsqrt.f32 %v934_v17  ;;  %1153 = vadd.xlane.f32.xlu0 %v1133_v55  ;;  %v999_v54 = vsub.f32 %v1740_v20, %v871_v57  ;;  %v1000_v35 = vsub.f32 %v1742_v21, %v872_v40  ;;  %v747_v1 = vmul.f32 %v2044_v49, %v2044_v49 }
 0x292   :  { %1422 = vrsqrt.f32 %v933_v30  ;;  %v1409_v23 = vpop.eup %1408  ;;  %v998_v39 = vsub.f32 %v1754_v32, %v2040_v18  ;;  %v997_v37 = vsub.f32 %v1752_v31, %v2042_v5  ;;  %v748_v38 = vmul.f32 %v2046_v0, %v2046_v0 }
 0x293   :  { %v1411_v62 = vpop.eup %1410  ;;  %v920_v45 = vmul.f32 %v1409_v23, %v1647_v10  ;;  %v2066_v31 = vmul.f32 0.015625, %v570_v46  ;;  %v2068_v28 = vmul.f32 0.015625, %v572_v25 }
 0x294   :  { %v504_v36 = vpop.xlane.xlu1 %503  ;;  %v919_v53 = vmul.f32 %v1411_v62, %v1647_v10 }
 0x295   :  { %v502_v63 = vpop.xlane.xlu0 %501  ;;  %v2062_v22 = vmul.f32 0.015625, %v504_v36 }
 0x296   :  { %v1413_v34 = vpop.eup %1412  ;;  %v2064_v52 = vmul.f32 0.015625, %v502_v63 }
 0x297   :  { %v1415_v11 = vpop.eup %1414  ;;  %v968_v33 = vmul.f32 %v1413_v34, %v1651_v13  ;;  %v746_v61 = vmul.f32 %v2062_v22, %v2062_v22 }
 0x298   :  { %v568_v6 = vpop.xlane.xlu1 %567  ;;  %v967_v7 = vmul.f32 %v1415_v11, %v1651_v13  ;;  %v745_v36 = vmul.f32 %v2064_v52, %v2064_v52 }
 0x299   :  { %v566_v9 = vpop.xlane.xlu0 %565  ;;  %v984_v42 = vadd.f32 %v968_v33, %v920_v45  ;;  %v2072_v24 = vmul.f32 0.015625, %v568_v6 }
 0x29a   :  { %v983_v14 = vadd.f32 %v967_v7, %v919_v53  ;;  %v1417_v16 = vpop.eup %1416  ;;  %v2074_v55 = vmul.f32 0.015625, %v566_v9 }
 0x29b   :  { %v1016_v20 = vmul.f32 %v1000_v35, %v984_v42  ;;  %v1419_v21 = vpop.eup %1418  ;;  %v918_v34 = vmul.f32 %v1417_v16, %v1647_v10  ;;  %v794_v40 = vmul.f32 %v2072_v24, %v2072_v24 }
 0x29c   :  { %v652_v2 = vpop.xlane.xlu1 %651  ;;  %v1015_v15 = vmul.f32 %v999_v54, %v983_v14  ;;  %v917_v57 = vmul.f32 %v1419_v21, %v1647_v10  ;;  %v793_v11 = vmul.f32 %v2074_v55, %v2074_v55 }
 0x29d   :  { %v650_v19 = vpop.xlane.xlu0 %649  ;;  %v668_v32 = vmul.f32 0.015625, %v652_v2  ;;  %v1039_v29 = vmul.f32 %v1864_v43, %v1016_v20  ;;  %v796_v20 = vmul.f32 %v2068_v28, %v2068_v28 }
 0x29e   :  { %v667_v26 = vmul.f32 0.015625, %v650_v19  ;;  %v1421_v12 = vpop.eup %1420  ;;  %v1038_v17 = vmul.f32 %v1864_v43, %v1015_v15  ;;  %v795_v19 = vmul.f32 %v2066_v31, %v2066_v31 }
 0x29f   :  { %v1423_v30 = vpop.eup %1422  ;;  %v764_v47 = vsub.f32 %v668_v32, %v748_v38  ;;  %v1062_v23 = vadd.f32 %v1875_v41, %v1039_v29  ;;  %v966_v25 = vmul.f32 %v1421_v12, %v1651_v13 }
 0x2a0   :  { %v763_v48 = vsub.f32 %v667_v26, %v747_v1  ;;  %v648_v50 = vpop.xlane.xlu1 %647  ;;  %v1061_v46 = vadd.f32 %v1875_v41, %v1038_v17  ;;  %v965_v44 = vmul.f32 %v1423_v30, %v1651_v13 }
 0x2a1   :  { %v646_v51 = vpop.xlane.xlu0 %645  ;;  %v666_v63 = vmul.f32 0.015625, %v648_v50  ;;  %v1085_v27 = vmul.f32 %v1891_v60, %v1062_v23  ;;  %v780_v6 = vmax.f32 %v764_v47, 0.0  ;;  %v982_v53 = vadd.f32 %v966_v25, %v918_v34 }
 0x2a2   :  { %v665_v62 = vmul.f32 0.015625, %v646_v51  ;;  %v1084_v56 = vmul.f32 %v1891_v60, %v1061_v46  ;;  %v779_v9 = vmax.f32 %v763_v48, 0.0  ;;  %v981_v7 = vadd.f32 %v965_v44, %v917_v57 }
 0x2a3   :  { %v762_v18 = vsub.f32 %v666_v63, %v746_v61  ;;  %1112 = vadd.xlane.f32.xlu1 %v1085_v27  ;;  %v1140_v14 = vmul.f32 %v1903_v8, %v1062_v23  ;;  %v1139_v1 = vmul.f32 %v1903_v8, %v1061_v46  ;;  %v1014_v38 = vmul.f32 %v998_v39, %v982_v53 }
 0x2a4   :  { %v761_v5 = vsub.f32 %v665_v62, %v745_v36  ;;  %1110 = vadd.xlane.f32.xlu0 %v1084_v56  ;;  %v712_v45 = vpop.xlane.xlu1 %711  ;;  %v1013_v2 = vmul.f32 %v997_v37, %v981_v7  ;;  %v892_v39 = vadd.f32 1e-12, %v780_v6  ;;  %v891_v50 = vadd.f32 1e-12, %v779_v9 }
 0x2a5   :  { %v710_v33 = vpop.xlane.xlu0 %709  ;;  %v778_v54 = vmax.f32 %v762_v18, 0.0  ;;  %v730_v42 = vmul.f32 0.015625, %v712_v45  ;;  %v1037_v17 = vmul.f32 %v1864_v43, %v1014_v38  ;;  %v858_v18 = vmul.f32 %v2072_v24, %v1651_v13 }
 0x2a6   :  { %v777_v35 = vmax.f32 %v761_v5, 0.0  ;;  %v729_v16 = vmul.f32 0.015625, %v710_v33  ;;  %v1036_v30 = vmul.f32 %v1864_v43, %v1013_v2  ;;  %v857_v6 = vmul.f32 %v2074_v55, %v1651_v13 }
 0x2a7   :  { %v890_v15 = vadd.f32 1e-12, %v778_v54  ;;  %v810_v21 = vsub.f32 %v730_v42, %v794_v40  ;;  %1167 = vadd.xlane.f32.xlu1 %v1140_v14  ;;  %v1060_v23 = vadd.f32 %v1875_v41, %v1037_v17  ;;  %v860_v45 = vmul.f32 %v2068_v28, %v1651_v13 }
 0x2a8   :  { %v889_v32 = vadd.f32 1e-12, %v777_v35  ;;  %v809_v26 = vsub.f32 %v729_v16, %v793_v11  ;;  %1165 = vadd.xlane.f32.xlu0 %v1139_v1  ;;  %v716_v12 = vpop.xlane.xlu1 %715  ;;  %v1059_v46 = vadd.f32 %v1875_v41, %v1036_v30  ;;  %v842_v33 = vmul.f32 %v1647_v10, %v2062_v22 }
 0x2a9   :  { %v714_v29 = vpop.xlane.xlu0 %713  ;;  %v826_v37 = vmax.f32 %v810_v21, 0.0  ;;  %v732_v47 = vmul.f32 0.015625, %v716_v12  ;;  %1424 = vrsqrt.f32 %v890_v15  ;;  %v1083_v63 = vmul.f32 %v1891_v60, %v1060_v23 }
 0x2aa   :  { %v731_v48 = vmul.f32 0.015625, %v714_v29  ;;  %v825_v51 = vmax.f32 %v809_v26, 0.0  ;;  %1426 = vrsqrt.f32 %v889_v32  ;;  %v1082_v62 = vmul.f32 %v1891_v60, %v1059_v46 }
 0x2ab   :  { %v938_v25 = vadd.f32 1e-12, %v826_v37  ;;  %v812_v44 = vsub.f32 %v732_v47, %v796_v20  ;;  %1108 = vadd.xlane.f32.xlu1 %v1083_v63  ;;  %v1138_v40 = vmul.f32 %v1903_v8, %v1060_v23  ;;  %v1137_v11 = vmul.f32 %v1903_v8, %v1059_v46 }
 0x2ac   :  { %v811_v61 = vsub.f32 %v731_v48, %v795_v19  ;;  %v937_v36 = vadd.f32 1e-12, %v825_v51  ;;  %1106 = vadd.xlane.f32.xlu0 %v1082_v62  ;;  %v859_v7 = vmul.f32 %v2066_v31, %v1651_v13  ;;  %v841_v54 = vmul.f32 %v1647_v10, %v2064_v52 }
 0x2ad   :  { %1428 = vrsqrt.f32 %v938_v25  ;;  %v828_v27 = vmax.f32 %v812_v44, 0.0  ;;  %v844_v24 = vmul.f32 %v1647_v10, %v2046_v0  ;;  %v874_v42 = vadd.f32 %v858_v18, %v842_v33 }
 0x2ae   :  { %v827_v56 = vmax.f32 %v811_v61, 0.0  ;;  %1430 = vrsqrt.f32 %v937_v36  ;;  %v843_v22 = vmul.f32 %v1647_v10, %v2044_v49  ;;  %v873_v16 = vadd.f32 %v857_v6, %v841_v54 }
 0x2af   :  { %1432 = vrsqrt.f32 %v892_v39  ;;  %v940_v34 = vadd.f32 1e-12, %v828_v27  ;;  %1163 = vadd.xlane.f32.xlu1 %v1138_v40  ;;  %v876_v52 = vadd.f32 %v860_v45, %v844_v24  ;;  %v1002_v21 = vsub.f32 %v1798_v4, %v874_v42 }
 0x2b0   :  { %v939_v57 = vadd.f32 1e-12, %v827_v56  ;;  %1434 = vrsqrt.f32 %v891_v50  ;;  %1161 = vadd.xlane.f32.xlu0 %v1137_v11  ;;  %v875_v20 = vadd.f32 %v859_v7, %v843_v22  ;;  %v1001_v49 = vsub.f32 %v1796_v3, %v873_v16 }
 0x2b1   :  { %1436 = vrsqrt.f32 %v940_v34  ;;  %v1004_v17 = vsub.f32 %v1786_v59, %v876_v52 }
 0x2b2   :  { %1438 = vrsqrt.f32 %v939_v57  ;;  %v1003_v37 = vsub.f32 %v1784_v58, %v875_v20 }
 0x2b6   :  { %v1425_v5 = vpop.eup %1424 }
 0x2b7   :  { %v1427_v9 = vpop.eup %1426  ;;  %v922_v55 = vmul.f32 %v1425_v5, %v1647_v10 }
 0x2b8   :  { %v921_v1 = vmul.f32 %v1427_v9, %v1647_v10 }
 0x2ba   :  { %v1429_v53 = vpop.eup %1428 }
 0x2bb   :  { %v1431_v35 = vpop.eup %1430  ;;  %v970_v14 = vmul.f32 %v1429_v53, %v1651_v13 }
 0x2bc   :  { %v1433_v28 = vpop.eup %1432  ;;  %v969_v31 = vmul.f32 %v1431_v35, %v1651_v13 }
 0x2bd   :  { %v1435_v38 = vpop.eup %1434  ;;  %v986_v2 = vadd.f32 %v970_v14, %v922_v55  ;;  %v924_v32 = vmul.f32 %v1433_v28, %v1647_v10 }
 0x2be   :  { %v1437_v19 = vpop.eup %1436  ;;  %v985_v0 = vadd.f32 %v969_v31, %v921_v1  ;;  %v923_v12 = vmul.f32 %v1435_v38, %v1647_v10 }
 0x2bf   :  { %v1439_v15 = vpop.eup %1438  ;;  %v972_v26 = vmul.f32 %v1437_v19, %v1651_v13  ;;  %v1018_v39 = vmul.f32 %v1002_v21, %v986_v2 }
 0x2c0   :  { %v971_v29 = vmul.f32 %v1439_v15, %v1651_v13  ;;  %v1017_v48 = vmul.f32 %v1001_v49, %v985_v0 }
 0x2c1   :  { %v988_v30 = vadd.f32 %v972_v26, %v924_v32  ;;  %v1041_v23 = vmul.f32 %v1864_v43, %v1018_v39 }
 0x2c2   :  { %v987_v47 = vadd.f32 %v971_v29, %v923_v12  ;;  %v1040_v10 = vmul.f32 %v1864_v43, %v1017_v48 }
 0x2c3   :  { %v1020_v50 = vmul.f32 %v1004_v17, %v988_v30  ;;  %v1064_v58 = vadd.f32 %v1875_v41, %v1041_v23 }
 0x2c4   :  { %v1019_v4 = vmul.f32 %v1003_v37, %v987_v47  ;;  %v1063_v44 = vadd.f32 %v1875_v41, %v1040_v10 }
 0x2c5   :  { %v1043_v51 = vmul.f32 %v1864_v43, %v1020_v50  ;;  %v1087_v61 = vmul.f32 %v1891_v60, %v1064_v58 }
 0x2c6   :  { %v1042_v3 = vmul.f32 %v1864_v43, %v1019_v4  ;;  %v1086_v36 = vmul.f32 %v1891_v60, %v1063_v44  ;;  %v1142_v43 = vmul.f32 %v1903_v8, %v1064_v58  ;;  %v1141_v63 = vmul.f32 %v1903_v8, %v1063_v44 }
 0x2c7   :  { %v1066_v13 = vadd.f32 %v1875_v41, %v1043_v51 }
 0x2c8   :  { %v1065_v59 = vadd.f32 %v1875_v41, %v1042_v3 }
 0x2c9   :  { %v1089_v46 = vmul.f32 %v1891_v60, %v1066_v13  ;;  %v1144_v62 = vmul.f32 %v1903_v8, %v1066_v13 }
 0x2ca   :  { %v1088_v25 = vmul.f32 %v1891_v60, %v1065_v59  ;;  %v1143_v27 = vmul.f32 %v1903_v8, %v1065_v59  ;;  %v2153_v60 = vld [vmem:[%s2260_s8] ss:$0 sm:$0xff] }
 0x2cb   :  { %1120 = vadd.xlane.f32.xlu1 %v1089_v46 }
 0x2cc   :  { %1118 = vadd.xlane.f32.xlu0 %v1088_v25 }
 0x2cf   :  { %1116 = vadd.xlane.f32.xlu1 %v1087_v61 }
 0x2d0   :  { %1114 = vadd.xlane.f32.xlu0 %v1086_v36 }
 0x2d3   :  { %1171 = vadd.xlane.f32.xlu1 %v1142_v43 }
 0x2d4   :  { %1169 = vadd.xlane.f32.xlu0 %v1141_v63 }
 0x2d7   :  { %1175 = vadd.xlane.f32.xlu1 %v1144_v62 }
 0x2d8   :  { %1173 = vadd.xlane.f32.xlu0 %v1143_v27 }
 0x2e8   :  { %v1095_v41 = vpop.xlane.xlu0 %1094 }
 0x2ec   :  { %v1097_v56 = vpop.xlane.xlu1 %1096  ;;  %v1150_v34 = vpop.xlane.xlu0 %1149 }
 0x2ed   :  { %v1180_v57 = vsel %vm1177_vm4, %v1095_v41, %v1150_v34 }
 0x2ee   :  { %v1203_v40 = vadd.f32 %v2153_v60, %v1180_v57 }
 0x2f0   :  { %1220 = vst.msk [vmem:[%s2261_s10 + $0x10] sm:$0xff] %vm1217_vm5, %v1203_v40  ;;  %v1152_v8 = vpop.xlane.xlu1 %1151 }
 0x2f1   :  { %v1091_v11 = vpop.xlane.xlu0 %1090  ;;  %v1181_v18 = vsel %vm1177_vm4, %v1097_v56, %v1152_v8 }
 0x2f2   :  { %v1204_v5 = vadd.f32 %v2153_v60, %v1181_v18 }
 0x2f4   :  { %1221 = vst.msk [vmem:[%s2261_s10 + $0x18] sm:$0xff] %vm1217_vm5, %v1204_v5 }
 0x2f5   :  { %v1146_v6 = vpop.xlane.xlu0 %1145 }
 0x2f6   :  { %v1178_v9 = vsel %vm1177_vm4, %v1091_v11, %v1146_v6 }
 0x2f7   :  { %v1201_v45 = vadd.f32 %v2153_v60, %v1178_v9  ;;  %v1093_v33 = vpop.xlane.xlu1 %1092 }
 0x2f9   :  { %1218 = vst.msk [vmem:[%s2261_s10] sm:$0xff] %vm1217_vm5, %v1201_v45 }
 0x2fb   :  { %v1148_v53 = vpop.xlane.xlu1 %1147 }
 0x2fc   :  { %v1179_v7 = vsel %vm1177_vm4, %v1093_v33, %v1148_v53 }
 0x2fd   :  { %v1202_v54 = vadd.f32 %v2153_v60, %v1179_v7 }
 0x2ff   :  { %1219 = vst.msk [vmem:[%s2261_s10 + $0x8] sm:$0xff] %vm1217_vm5, %v1202_v54 }
 0x30c   :  { %v1105_v35 = vpop.xlane.xlu1 %1104 }
 0x30d   :  { %v1103_v24 = vpop.xlane.xlu0 %1102 }
 0x310   :  { %v1160_v42 = vpop.xlane.xlu1 %1159 }
 0x311   :  { %v1158_v55 = vpop.xlane.xlu0 %1157  ;;  %v1185_v14 = vsel %vm1177_vm4, %v1105_v35, %v1160_v42 }
 0x312   :  { %v1184_v28 = vsel %vm1177_vm4, %v1103_v24, %v1158_v55  ;;  %v1208_v22 = vadd.f32 %v2153_v60, %v1185_v14 }
 0x313   :  { %v1207_v16 = vadd.f32 %v2153_v60, %v1184_v28 }
 0x314   :  { %1225 = vst.msk [vmem:[%s2261_s10 + $0x38] sm:$0xff] %vm1217_vm5, %v1208_v22 }
 0x315   :  { %1224 = vst.msk [vmem:[%s2261_s10 + $0x30] sm:$0xff] %vm1217_vm5, %v1207_v16  ;;  %v1101_v1 = vpop.xlane.xlu1 %1100 }
 0x316   :  { %v1099_v31 = vpop.xlane.xlu0 %1098 }
 0x319   :  { %v1156_v38 = vpop.xlane.xlu1 %1155 }
 0x31a   :  { %v1154_v52 = vpop.xlane.xlu0 %1153  ;;  %v1183_v2 = vsel %vm1177_vm4, %v1101_v1, %v1156_v38 }
 0x31b   :  { %v1182_v19 = vsel %vm1177_vm4, %v1099_v31, %v1154_v52  ;;  %v1206_v20 = vadd.f32 %v2153_v60, %v1183_v2 }
 0x31c   :  { %v1205_v0 = vadd.f32 %v2153_v60, %v1182_v19 }
 0x31d   :  { %1223 = vst.msk [vmem:[%s2261_s10 + $0x28] sm:$0xff] %vm1217_vm5, %v1206_v20 }
 0x31e   :  { %1222 = vst.msk [vmem:[%s2261_s10 + $0x20] sm:$0xff] %vm1217_vm5, %v1205_v0 }
 0x32c   :  { %v1113_v15 = vpop.xlane.xlu1 %1112 }
 0x32d   :  { %v1111_v21 = vpop.xlane.xlu0 %1110 }
 0x330   :  { %v1168_v32 = vpop.xlane.xlu1 %1167 }
 0x331   :  { %v1166_v26 = vpop.xlane.xlu0 %1165  ;;  %v1189_v49 = vsel %vm1177_vm4, %v1113_v15, %v1168_v32 }
 0x332   :  { %v1188_v12 = vsel %vm1177_vm4, %v1111_v21, %v1166_v26  ;;  %v1212_v29 = vadd.f32 %v2153_v60, %v1189_v49 }
 0x333   :  { %v1211_v17 = vadd.f32 %v2153_v60, %v1188_v12 }
 0x334   :  { %1229 = vst.msk [vmem:[%s2261_s10 + $0x58] sm:$0xff] %vm1217_vm5, %v1212_v29  ;;  %v1109_v30 = vpop.xlane.xlu1 %1108 }
 0x335   :  { %1228 = vst.msk [vmem:[%s2261_s10 + $0x50] sm:$0xff] %vm1217_vm5, %v1211_v17  ;;  %v1107_v39 = vpop.xlane.xlu0 %1106 }
 0x338   :  { %v1164_v37 = vpop.xlane.xlu1 %1163 }
 0x339   :  { %v1162_v47 = vpop.xlane.xlu0 %1161  ;;  %v1187_v48 = vsel %vm1177_vm4, %v1109_v30, %v1164_v37 }
 0x33a   :  { %v1186_v50 = vsel %vm1177_vm4, %v1107_v39, %v1162_v47  ;;  %v1210_v4 = vadd.f32 %v2153_v60, %v1187_v48 }
 0x33b   :  { %v1209_v51 = vadd.f32 %v2153_v60, %v1186_v50 }
 0x33c   :  { %1227 = vst.msk [vmem:[%s2261_s10 + $0x48] sm:$0xff] %vm1217_vm5, %v1210_v4 }
 0x33d   :  { %1226 = vst.msk [vmem:[%s2261_s10 + $0x40] sm:$0xff] %vm1217_vm5, %v1209_v51 }
 0x354   :  { %v1121_v23 = vpop.xlane.xlu1 %1120 }
 0x355   :  { %v1119_v3 = vpop.xlane.xlu0 %1118 }
 0x358   :  { %v1117_v10 = vpop.xlane.xlu1 %1116 }
 0x359   :  { %v1115_v13 = vpop.xlane.xlu0 %1114 }
 0x35c   :  { %v1172_v59 = vpop.xlane.xlu1 %1171 }
 0x35d   :  { %v1191_v46 = vsel %vm1177_vm4, %v1117_v10, %v1172_v59  ;;  %v1170_v58 = vpop.xlane.xlu0 %1169 }
 0x35e   :  { %v1214_v25 = vadd.f32 %v2153_v60, %v1191_v46  ;;  %v1190_v44 = vsel %vm1177_vm4, %v1115_v13, %v1170_v58 }
 0x35f   :  { %v1213_v61 = vadd.f32 %v2153_v60, %v1190_v44 }
 0x360   :  { %1231 = vst.msk [vmem:[%s2261_s10 + $0x68] sm:$0xff] %vm1217_vm5, %v1214_v25  ;;  %v1176_v36 = vpop.xlane.xlu1 %1175 }
 0x361   :  { %1230 = vst.msk [vmem:[%s2261_s10 + $0x60] sm:$0xff] %vm1217_vm5, %v1213_v61  ;;  %v1193_v43 = vsel %vm1177_vm4, %v1121_v23, %v1176_v36  ;;  %v1174_v63 = vpop.xlane.xlu0 %1173 }
 0x362   :  { %v1216_v62 = vadd.f32 %v2153_v60, %v1193_v43  ;;  %v1192_v27 = vsel %vm1177_vm4, %v1119_v3, %v1174_v63 }
 0x363   :  { %v1215_v41 = vadd.f32 %v2153_v60, %v1192_v27 }
 0x364   :  { %1233 = vst.msk [vmem:[%s2261_s10 + $0x78] sm:$0xff] %vm1217_vm5, %v1216_v62 }
 0x365   :  { %1232 = vst.msk [vmem:[%s2261_s10 + $0x70] sm:$0xff] %vm1217_vm5, %v1215_v41 }

</bundles_post_ra>
